<compile_context>
chip_gen: v7x
topology: tpu7x:2x2x1
jax: 0.10.0
libtpu: 0.0.40
codegen_flags: <defaults>
</compile_context>

<pallas_src>
import functools

import jax
import jax.numpy as jnp
from jax.experimental import pallas as pl
from jax.experimental.pallas import tpu as pltpu

VMEM_SPEC = pl.BlockSpec(memory_space=pltpu.MemorySpace.VMEM)
F32 = jnp.float32
BF16 = jnp.bfloat16


# ---------------------------------------------------------------------------
# Row layout of the packed (2H+18, 128) f32 "bias + decoder-L1" operand.
# Shared by pack_params() and the kernel (all static Python).
# ---------------------------------------------------------------------------
def _bias_rows(H):
    b = 2 * H
    return dict(cwh=0, cwz=H, cwt=b, cb1=b + 1, lb2=b + 2, dbm=b + 3,
                cbm=b + 7, lb3=b + 10, dbl=b + 11, hb2=b + 12, dhb=b + 13,
                lb1=b + 14, db1=b + 15, bm1=b + 16, bs1=b + 17)


# ---------------------------------------------------------------------------
# Single fused kernel: shared L1, latent enc (both+ctx mean), det enc,
# reparameterization, decoder.
# ---------------------------------------------------------------------------
def fused_np_kernel(training, B, Tb, Tc, X, H,
                    inp_ref, eps_ref, wstk_ref, win_ref, w128_ref, wout_ref,
                    musig_ref, dec_ref):
    MB, MC = B * Tb, B * Tc
    R = _bias_rows(H)
    r0 = ((X + 1 + 7) // 8) * 8           # 8-aligned offset of LH1W in WIN256

    def row(name, width=128):
        i = R[name]
        return w128_ref[i:i + 1, 0:width]

    x_f32 = inp_ref[...]                   # (MB+MC, X+1) rows = [both ; ctx]
    times = x_f32[0:Tb, 0:1]               # both-times (batch-0 block), f32
    x = x_f32.astype(BF16)

    # ---- fused first layer: [lat | det] lane-concat over all rows ----------
    h1 = jnp.dot(x, win_ref[0:X + 1, :], preferred_element_type=F32)  # (M,256)

    # ---- latent trunk on the B*Tb 'both' rows only --------------------------
    hl = jax.nn.relu(h1[:MB, :128] + row('lb1'))
    hl = jax.nn.relu(jnp.dot(hl.astype(BF16), wstk_ref[0],
                             preferred_element_type=F32) + row('lb2'))
    r_flat = (jnp.dot(hl.astype(BF16), wout_ref[:, 0:H],
                      preferred_element_type=F32) + row('lb3', H))    # (MB,H)

    # ---- static averaging masks built in-kernel (iota compares, no div) ----
    ro = jax.lax.broadcasted_iota(jnp.int32, (2 * B, MB), 0)
    co = jax.lax.broadcasted_iota(jnp.int32, (2 * B, MB), 1)
    bo = jnp.where(ro < B, ro, ro - B)
    start = bo * Tb
    in_b = (co >= start) & (co < start + Tb)
    w_both = jnp.where(in_b, 1.0 / Tb, 0.0)
    w_ctx = jnp.where(in_b & (co < start + Tc), 1.0 / Tc, 0.0)
    avg_lat = jnp.where(ro < B, w_both, w_ctx).astype(F32)            # (2B,MB)
    r = jnp.dot(avg_lat, r_flat, preferred_element_type=F32)          # (2B,H)

    # ---- latent heads: one wide 256 matmul, 128-lane split, fused L2 -------
    rr = jnp.dot(r.astype(BF16), win_ref[r0:r0 + H, :],
                 preferred_element_type=F32)                          # (2B,256)
    hm = jax.nn.relu(rr[:, :128] + row('bm1'))
    hs = jax.nn.relu(rr[:, 128:] + row('bs1'))
    mu = (jnp.dot(hm.astype(BF16), wout_ref[:, 2 * H:3 * H],
                  preferred_element_type=F32)
          + w128_ref[R['hb2']:R['hb2'] + 1, 0:H])                     # (2B,H)
    sg = (jnp.dot(hs.astype(BF16), wout_ref[:, 3 * H:4 * H],
                  preferred_element_type=F32)
          + w128_ref[R['hb2']:R['hb2'] + 1, H:2 * H])
    sig = 0.1 + 0.9 * jax.nn.sigmoid(sg)
    musig_ref[:, 0:H] = mu
    musig_ref[:, H:2 * H] = sig

    # ---- deterministic encoder on the B*Tc ctx rows only --------------------
    hd = jax.nn.relu(h1[MB:, 128:] + row('db1'))
    for l in range(4):
        hd = jax.nn.relu(jnp.dot(hd.astype(BF16), wstk_ref[1 + l],
                                 preferred_element_type=F32)
                         + w128_ref[R['dbm'] + l:R['dbm'] + l + 1, :])
    d = (jnp.dot(hd.astype(BF16), wout_ref[:, H:2 * H],
                 preferred_element_type=F32) + row('dbl', H))         # (MC,H)

    rd = jax.lax.broadcasted_iota(jnp.int32, (B, MC), 0)
    cd = jax.lax.broadcasted_iota(jnp.int32, (B, MC), 1)
    avg_det = jnp.where((cd >= rd * Tc) & (cd < (rd + 1) * Tc),
                        1.0 / Tc, 0.0).astype(F32)                    # (B,MC)
    r_det = jnp.dot(avg_det, d, preferred_element_type=F32)           # (B,H)

    # ---- reparameterization (f32; eps supplied from host) -------------------
    if training:
        z = mu[:B] + sig[:B] * eps_ref[...]
    else:
        z = mu[B:]                         # eval: z = mu_context

    # ---- decoder: layer-1 built from split matmuls + broadcast add ----------
    hz = (jnp.dot(r_det, w128_ref[R['cwh']:R['cwh'] + H, :],
                  preferred_element_type=F32)
          + jnp.dot(z, w128_ref[R['cwz']:R['cwz'] + H, :],
                    preferred_element_type=F32)
          + row('cb1'))                                               # (B,128)
    tpart = times * row('cwt')                                        # (Tb,128)
    hdec = jax.nn.relu(hz[:, None, :] + tpart[None, :, :]).reshape(MB, 128)
    for l in range(3):
        hdec = jax.nn.relu(jnp.dot(hdec.astype(BF16), wstk_ref[5 + l],
                                   preferred_element_type=F32)
                           + w128_ref[R['cbm'] + l:R['cbm'] + l + 1, :])
    head = (jnp.dot(hdec.astype(BF16), wout_ref[:, 4 * H:4 * H + 2 * X],
                    preferred_element_type=F32) + row('dhb', 2 * X))  # (MB,2X)
    cidx = jax.lax.broadcasted_iota(jnp.int32, head.shape, 1)
    dec_ref[...] = jnp.where(cidx < X, head,
                             0.1 + 0.9 * jax.nn.softplus(head))


# ---------------------------------------------------------------------------
# Weight packing into 4 operands (done once, outside the hot path)
# ---------------------------------------------------------------------------
def pack_params(p):
    (lw1, lb1), (lw2, lb2), (lw3, lb3) = p["lat_enc"]
    (wm1, bm1), (wm2, bm2) = p["lat_mu"]
    (ws1, bs1), (ws2, bs2) = p["lat_sig"]
    det = p["det_enc"]
    dw1, db1 = det[0]
    det_mid = det[1:5]
    dwl, dbl_b = det[5]
    dec = p["dec"]
    w1, cb1 = dec[0]
    dec_mid = dec[1:4]
    wmu, bmu = p["dec_mu"]
    wsig, bsig = p["dec_sig"]

    X = wmu.shape[1]
    H = lw3.shape[1]

    # 1) every 128x128 hidden weight, stacked, bf16
    wstk = jnp.stack([lw2] + [w for w, _ in det_mid]
                     + [w for w, _ in dec_mid]).astype(BF16)

    # 2) 256-lane pack: [lw1|dw1] (8-row padded) ; [wm1|ws1], bf16
    r0 = ((X + 1 + 7) // 8) * 8
    w1wide = jnp.pad(jnp.concatenate([lw1, dw1], axis=1),
                     ((0, r0 - (X + 1)), (0, 0)))
    win256 = jnp.concatenate(
        [w1wide, jnp.concatenate([wm1, ws1], axis=1)], axis=0).astype(BF16)

    # 3) 128-lane f32 pack: decoder-L1 weight rows + all biases
    def pad128(v):
        return jnp.pad(v, ((0, 0), (0, 128 - v.shape[1])))
    rows = [w1[1:1 + H], w1[1 + H:1 + 2 * H], w1[0:1], cb1, lb2]
    rows += [b for _, b in det_mid]
    rows += [b for _, b in dec_mid]
    rows += [pad128(lb3), pad128(dbl_b),
             pad128(jnp.concatenate([bm2, bs2], axis=1)),
             pad128(jnp.concatenate([bmu, bsig], axis=1)),
             lb1, db1, bm1, bs1]
    w128 = jnp.concatenate(rows, axis=0).astype(F32)

    # 4) (128, pad) bf16 lane-concat of every (128, small) output weight
    wout = jnp.concatenate([lw3, dwl, wm2, ws2, wmu, wsig], axis=1)
    wout = jnp.pad(wout, ((0, 0), (0, (-wout.shape[1]) % 128))).astype(BF16)

    return wstk, win256, w128, wout


# ---------------------------------------------------------------------------
# Forward wrapper
# ---------------------------------------------------------------------------
def neural_process_forward(packed, trajs, times, context_idx, target_idx,
                           h_size, eps_key=None, training=True):
    B, _, X = trajs.shape
    H = h_size
    both_idx = jnp.concatenate([context_idx, target_idx])
    Tb = int(both_idx.shape[0])
    Tc = int(context_idx.shape[0])

    times_both = jnp.take(times, both_idx)
    trajs_both = jnp.take(trajs, both_idx, axis=1)
    times_ctx = jnp.take(times, context_idx)
    trajs_ctx = jnp.take(trajs, context_idx, axis=1)

    def flat_inp(t, tr):
        Tn = tr.shape[1]
        return jnp.concatenate(
            [jnp.broadcast_to(t[None, :, None], (B, Tn, 1)), tr],
            axis=-1).reshape(B * Tn, X + 1)

    # row-stacked input: [both rows (B*Tb) ; ctx rows (B*Tc)]
    # (keep B*Tb a multiple of 8 for a view-only decoder reshape)
    inp = jnp.concatenate([flat_inp(times_both, trajs_both),
                           flat_inp(times_ctx, trajs_ctx)], axis=0)

    if training:
        eps = jax.random.normal(eps_key, (B, H), jnp.float32)
    else:
        eps = jnp.zeros((B, H), jnp.float32)

    musig, dec_out = pl.pallas_call(
        functools.partial(fused_np_kernel, training, B, Tb, Tc, X, H),
        out_shape=(jax.ShapeDtypeStruct((2 * B, 2 * H), jnp.float32),
                   jax.ShapeDtypeStruct((B * Tb, 2 * X), jnp.float32)),
        in_specs=[VMEM_SPEC] * 6,
        out_specs=(VMEM_SPEC, VMEM_SPEC),
        compiler_params=pltpu.CompilerParams(
            vmem_limit_bytes=16 * 1024 * 1024),
    )(inp, eps, *packed)

    x_mu = dec_out[:, :X].reshape(B, Tb, X)
    x_sigma = dec_out[:, X:].reshape(B, Tb, X)
    if training:
        return (x_mu, x_sigma,
                musig[:B, :H], musig[:B, H:], musig[B:, :H], musig[B:, H:])
    return x_mu, x_sigma


# ---------------------------------------------------------------------------
# Deterministic parameter init (mimics nn.Linear default U(-1/sqrt(fan_in),.))
# ---------------------------------------------------------------------------
def init_linear(key, fan_in, fan_out):
    kw, kb = jax.random.split(key)
    bound = 1.0 / jnp.sqrt(jnp.float32(fan_in))
    w = jax.random.uniform(kw, (fan_in, fan_out), jnp.float32, -bound, bound)
    b = jax.random.uniform(kb, (1, fan_out), jnp.float32, -bound, bound)
    return w, b


def init_params(key, x_size, h_size):
    z_size = h_size
    keys = iter(jax.random.split(key, 32))

    def lin(i, o):
        return init_linear(next(keys), i, o)

    return dict(
        lat_enc=[lin(x_size + 1, 128), lin(128, 128), lin(128, h_size)],
        lat_mu=[lin(h_size, 128), lin(128, h_size)],
        lat_sig=[lin(h_size, 128), lin(128, h_size)],
        det_enc=[lin(x_size + 1, 128), lin(128, 128), lin(128, 128),
                 lin(128, 128), lin(128, 128), lin(128, h_size)],
        dec=[lin(h_size + z_size + 1, 128), lin(128, 128),
             lin(128, 128), lin(128, 128)],
        dec_mu=lin(128, x_size),
        dec_sig=lin(128, x_size),
    )


# ---------------------------------------------------------------------------
# Pure-JAX reference (f32, HIGHEST precision) for numerical verification
# ---------------------------------------------------------------------------
_HP = jax.lax.Precision.HIGHEST


def _ref_mlp(x, layers, relu_last=False):
    n = len(layers)
    for i, (w, b) in enumerate(layers):
        x = jnp.dot(x, w, precision=_HP) + b
        if i < n - 1 or relu_last:
            x = jax.nn.relu(x)
    return x


def _ref_latent(p, t, tr):
    B, T, X = tr.shape
    inp = jnp.concatenate(
        [jnp.broadcast_to(t[None, :, None], (B, T, 1)), tr],
        axis=-1).reshape(B * T, X + 1)
    r = _ref_mlp(inp, p["lat_enc"]).reshape(B, T, -1).mean(1)
    mu = _ref_mlp(r, p["lat_mu"])
    sig = 0.1 + 0.9 * jax.nn.sigmoid(_ref_mlp(r, p["lat_sig"]))
    return mu, sig


def _ref_det(p, t, tr):
    B, T, X = tr.shape
    inp = jnp.concatenate(
        [jnp.broadcast_to(t[None, :, None], (B, T, 1)), tr],
        axis=-1).reshape(B * T, X + 1)
    return _ref_mlp(inp, p["det_enc"]).reshape(B, T, -1).mean(1)


def _ref_decoder(p, t, h, z):
    B, H = h.shape
    T = t.shape[0]
    tt = jnp.broadcast_to(t[None, :, None], (B, T, 1)).reshape(B * T, 1)
    hh = jnp.broadcast_to(h[:, None, :], (B, T, H)).reshape(B * T, H)
    zz = jnp.broadcast_to(z[:, None, :], (B, T, H)).reshape(B * T, H)
    hid = _ref_mlp(jnp.concatenate([tt, hh, zz], axis=1), p["dec"],
                   relu_last=True)
    wmu, bmu = p["dec_mu"]
    wsig, bsig = p["dec_sig"]
    X = wmu.shape[1]
    mu = jnp.dot(hid, wmu, precision=_HP) + bmu
    sig = 0.1 + 0.9 * jax.nn.softplus(jnp.dot(hid, wsig, precision=_HP) + bsig)
    return mu.reshape(B, T, X), sig.reshape(B, T, X)


def _ref_forward(p, trajs, times, context_idx, target_idx, eps_key):
    both_idx = jnp.concatenate([context_idx, target_idx])
    tb, xb = jnp.take(times, both_idx), jnp.take(trajs, both_idx, axis=1)
    tc, xc = jnp.take(times, context_idx), jnp.take(trajs, context_idx, axis=1)
    mu_all, sigma_all = _ref_latent(p, tb, xb)
    mu_ctx, sigma_ctx = _ref_latent(p, tc, xc)
    r_vec = _ref_det(p, tc, xc)
    eps = jax.random.normal(eps_key, sigma_all.shape, jnp.float32)
    z = mu_all + sigma_all * eps
    x_mu, x_sigma = _ref_decoder(p, tb, r_vec, z)
    return x_mu, x_sigma, mu_all, sigma_all, mu_ctx, sigma_ctx


def _ref_forward_eval(p, trajs, times, context_idx, target_idx):
    both_idx = jnp.concatenate([context_idx, target_idx])
    tb = jnp.take(times, both_idx)
    tc, xc = jnp.take(times, context_idx), jnp.take(trajs, context_idx, axis=1)
    mu_ctx, _ = _ref_latent(p, tc, xc)
    r_vec = _ref_det(p, tc, xc)
    return _ref_decoder(p, tb, r_vec, mu_ctx)


# ---------------------------------------------------------------------------
if __name__ == "__main__":
    x_size, h_size = 4, 32
    B, total_T = 2, 16

    key = jax.random.PRNGKey(0)
    k_params, k_trajs, k_eps = jax.random.split(key, 3)

    params = init_params(k_params, x_size, h_size)
    packed = pack_params(params)

    trajs = jax.random.normal(k_trajs, (B, total_T, x_size), jnp.float32)
    times = jnp.linspace(0.0, 1.0, total_T, dtype=jnp.float32)
    context_idx = jnp.array([0, 2, 4, 6, 8], dtype=jnp.int32)
    target_idx = jnp.array([1, 3, 5], dtype=jnp.int32)
    Tb = int(context_idx.shape[0] + target_idx.shape[0])   # 8 -> B*Tb = 16

    # ---- training path ------------------------------------------------------
    outs = neural_process_forward(packed, trajs, times, context_idx,
                                  target_idx, h_size, eps_key=k_eps,
                                  training=True)
    outs = jax.block_until_ready(outs)

    x_mu, x_sigma, mu_all, sigma_all, mu_ctx, sigma_ctx = outs
    assert x_mu.shape == (B, Tb, x_size)
    assert x_sigma.shape == (B, Tb, x_size)
    assert mu_all.shape == (B, h_size)
    assert sigma_all.shape == (B, h_size)
    assert mu_ctx.shape == (B, h_size)
    assert sigma_ctx.shape == (B, h_size)

    # bf16 MXU passes in the kernel vs. a HIGHEST-precision f32 reference.
    TOL = 5e-2
    refs = _ref_forward(params, trajs, times, context_idx, target_idx, k_eps)
    for got, want in zip(outs, refs):
        assert float(jnp.max(jnp.abs(got - want))) < TOL, "numerical mismatch"

    # ---- eval path (z = mu_context, no sampling) ----------------------------
    ev = neural_process_forward(packed, trajs, times, context_idx, target_idx,
                                h_size, training=False)
    ev = jax.block_until_ready(ev)
    ev_ref = _ref_forward_eval(params, trajs, times, context_idx, target_idx)
    for got, want in zip(ev, ev_ref):
        assert got.shape == want.shape
        assert float(jnp.max(jnp.abs(got - want))) < TOL, "eval mismatch"

    print("KERNEL_OK")
</pallas_src>

<mosaic_0001>
module attributes {stable_mosaic.version = 11 : i64} {
  func.func @fused_np_kernel(%arg0: memref<26x5xf32, #tpu.memory_space<vmem>>, %arg1: memref<2x32xf32, #tpu.memory_space<vmem>>, %arg2: memref<8x128x128xbf16, #tpu.memory_space<vmem>>, %arg3: memref<40x256xbf16, #tpu.memory_space<vmem>>, %arg4: memref<82x128xf32, #tpu.memory_space<vmem>>, %arg5: memref<128x256xbf16, #tpu.memory_space<vmem>>, %arg6: memref<4x64xf32, #tpu.memory_space<vmem>>, %arg7: memref<16x8xf32, #tpu.memory_space<vmem>>) attributes {dimension_semantics = [], scalar_prefetch = 0 : i64, scratch_operands = 0 : i64, tpu.core_type = #tpu.core_type<tc>} {
    %c0 = arith.constant 0 : index
    %c0_0 = arith.constant 0 : index
    %0 = vector.load %arg0[%c0, %c0_0] : memref<26x5xf32, #tpu.memory_space<vmem>>, vector<26x5xf32>
    %1 = vector.extract_strided_slice %0 {offsets = [0, 0], sizes = [8, 1], strides = [1, 1]} : vector<26x5xf32> to vector<8x1xf32>
    %2 = arith.truncf %0 : vector<26x5xf32> to vector<26x5xbf16>
    %c0_1 = arith.constant 0 : index
    %c0_2 = arith.constant 0 : index
    %3 = vector.load %arg3[%c0_1, %c0_2] : memref<40x256xbf16, #tpu.memory_space<vmem>>, vector<5x256xbf16>
    %cst = arith.constant dense<0.000000e+00> : vector<26x256xf32>
    %4 = tpu.matmul %2, %3, %cst {dimension_numbers = #tpu.dot_dimension_numbers<[1], [0], [0], [1], [0, 0, 1, 1], [], []>} : vector<26x5xbf16>, vector<5x256xbf16>, vector<26x256xf32> -> vector<26x256xf32>
    %5 = vector.extract_strided_slice %4 {offsets = [0, 0], sizes = [16, 128], strides = [1, 1]} : vector<26x256xf32> to vector<16x128xf32>
    %c78 = arith.constant 78 : index
    %c0_3 = arith.constant 0 : index
    %6 = vector.load %arg4[%c78, %c0_3] : memref<82x128xf32, #tpu.memory_space<vmem>>, vector<1x128xf32>
    %7 = vector.broadcast %6 : vector<1x128xf32> to vector<16x128xf32>
    %8 = arith.addf %5, %7 : vector<16x128xf32>
    %cst_4 = arith.constant 0.000000e+00 : f32
    %9 = vector.broadcast %cst_4 : f32 to vector<16x128xf32>
    %10 = arith.maximumf %8, %9 : vector<16x128xf32>
    %11 = arith.truncf %10 : vector<16x128xf32> to vector<16x128xbf16>
    %c0_5 = arith.constant 0 : index
    %c0_6 = arith.constant 0 : index
    %c0_7 = arith.constant 0 : index
    %12 = vector.load %arg2[%c0_5, %c0_6, %c0_7] : memref<8x128x128xbf16, #tpu.memory_space<vmem>>, vector<1x128x128xbf16>
    %13 = vector.shape_cast %12 : vector<1x128x128xbf16> to vector<128x128xbf16>
    %cst_8 = arith.constant dense<0.000000e+00> : vector<16x128xf32>
    %14 = tpu.matmul %11, %13, %cst_8 {dimension_numbers = #tpu.dot_dimension_numbers<[1], [0], [0], [1], [0, 0, 1, 1], [], []>} : vector<16x128xbf16>, vector<128x128xbf16>, vector<16x128xf32> -> vector<16x128xf32>
    %c66 = arith.constant 66 : index
    %c0_9 = arith.constant 0 : index
    %15 = vector.load %arg4[%c66, %c0_9] : memref<82x128xf32, #tpu.memory_space<vmem>>, vector<1x128xf32>
    %16 = vector.broadcast %15 : vector<1x128xf32> to vector<16x128xf32>
    %17 = arith.addf %14, %16 : vector<16x128xf32>
    %cst_10 = arith.constant 0.000000e+00 : f32
    %18 = vector.broadcast %cst_10 : f32 to vector<16x128xf32>
    %19 = arith.maximumf %17, %18 : vector<16x128xf32>
    %20 = arith.truncf %19 : vector<16x128xf32> to vector<16x128xbf16>
    %c0_11 = arith.constant 0 : index
    %c0_12 = arith.constant 0 : index
    %21 = vector.load %arg5[%c0_11, %c0_12] : memref<128x256xbf16, #tpu.memory_space<vmem>>, vector<128x32xbf16>
    %cst_13 = arith.constant dense<0.000000e+00> : vector<16x32xf32>
    %22 = tpu.matmul %20, %21, %cst_13 {dimension_numbers = #tpu.dot_dimension_numbers<[1], [0], [0], [1], [0, 0, 1, 1], [], []>} : vector<16x128xbf16>, vector<128x32xbf16>, vector<16x32xf32> -> vector<16x32xf32>
    %c74 = arith.constant 74 : index
    %c0_14 = arith.constant 0 : index
    %23 = vector.load %arg4[%c74, %c0_14] : memref<82x128xf32, #tpu.memory_space<vmem>>, vector<1x32xf32>
    %24 = vector.broadcast %23 : vector<1x32xf32> to vector<16x32xf32>
    %25 = arith.addf %22, %24 : vector<16x32xf32>
    %26 = tpu.iota {dimensions = array<i32: 0>} : vector<4x16xi32>
    %27 = tpu.iota {dimensions = array<i32: 1>} : vector<4x16xi32>
    %c2_i32 = arith.constant 2 : i32
    %28 = vector.broadcast %c2_i32 : i32 to vector<4x16xi32>
    %29 = arith.cmpi slt, %26, %28 : vector<4x16xi32>
    %c2_i32_15 = arith.constant 2 : i32
    %30 = vector.broadcast %c2_i32_15 : i32 to vector<4x16xi32>
    %31 = arith.subi %26, %30 : vector<4x16xi32>
    %32 = arith.select %29, %26, %31 : vector<4x16xi1>, vector<4x16xi32>
    %c8_i32 = arith.constant 8 : i32
    %33 = vector.broadcast %c8_i32 : i32 to vector<4x16xi32>
    %34 = arith.muli %32, %33 : vector<4x16xi32>
    %35 = arith.cmpi sge, %27, %34 : vector<4x16xi32>
    %c8_i32_16 = arith.constant 8 : i32
    %36 = vector.broadcast %c8_i32_16 : i32 to vector<4x16xi32>
    %37 = arith.addi %34, %36 : vector<4x16xi32>
    %38 = arith.cmpi slt, %27, %37 : vector<4x16xi32>
    %39 = arith.andi %35, %38 : vector<4x16xi1>
    %cst_17 = arith.constant 1.250000e-01 : f32
    %cst_18 = arith.constant 0.000000e+00 : f32
    %40 = vector.broadcast %cst_17 : f32 to vector<4x16xf32>
    %41 = vector.broadcast %cst_18 : f32 to vector<4x16xf32>
    %42 = arith.select %39, %40, %41 : vector<4x16xi1>, vector<4x16xf32>
    %c5_i32 = arith.constant 5 : i32
    %43 = vector.broadcast %c5_i32 : i32 to vector<4x16xi32>
    %44 = arith.addi %34, %43 : vector<4x16xi32>
    %45 = arith.cmpi slt, %27, %44 : vector<4x16xi32>
    %46 = arith.andi %39, %45 : vector<4x16xi1>
    %cst_19 = arith.constant 2.000000e-01 : f32
    %cst_20 = arith.constant 0.000000e+00 : f32
    %47 = vector.broadcast %cst_19 : f32 to vector<4x16xf32>
    %48 = vector.broadcast %cst_20 : f32 to vector<4x16xf32>
    %49 = arith.select %46, %47, %48 : vector<4x16xi1>, vector<4x16xf32>
    %c2_i32_21 = arith.constant 2 : i32
    %50 = vector.broadcast %c2_i32_21 : i32 to vector<4x16xi32>
    %51 = arith.cmpi slt, %26, %50 : vector<4x16xi32>
    %52 = arith.select %51, %42, %49 : vector<4x16xi1>, vector<4x16xf32>
    %cst_22 = arith.constant dense<0.000000e+00> : vector<4x32xf32>
    %53 = tpu.matmul %52, %25, %cst_22 {dimension_numbers = #tpu.dot_dimension_numbers<[1], [0], [0], [1], [0, 0, 1, 1], [], []>} : vector<4x16xf32>, vector<16x32xf32>, vector<4x32xf32> -> vector<4x32xf32>
    %54 = arith.truncf %53 : vector<4x32xf32> to vector<4x32xbf16>
    %c8 = arith.constant 8 : index
    %c0_23 = arith.constant 0 : index
    %55 = vector.load %arg3[%c8, %c0_23] : memref<40x256xbf16, #tpu.memory_space<vmem>>, vector<32x256xbf16>
    %cst_24 = arith.constant dense<0.000000e+00> : vector<4x256xf32>
    %56 = tpu.matmul %54, %55, %cst_24 {dimension_numbers = #tpu.dot_dimension_numbers<[1], [0], [0], [1], [0, 0, 1, 1], [], []>} : vector<4x32xbf16>, vector<32x256xbf16>, vector<4x256xf32> -> vector<4x256xf32>
    %57 = vector.extract_strided_slice %56 {offsets = [0, 0], sizes = [4, 128], strides = [1, 1]} : vector<4x256xf32> to vector<4x128xf32>
    %c80 = arith.constant 80 : index
    %c0_25 = arith.constant 0 : index
    %58 = vector.load %arg4[%c80, %c0_25] : memref<82x128xf32, #tpu.memory_space<vmem>>, vector<1x128xf32>
    %59 = vector.broadcast %58 : vector<1x128xf32> to vector<4x128xf32>
    %60 = arith.addf %57, %59 : vector<4x128xf32>
    %cst_26 = arith.constant 0.000000e+00 : f32
    %61 = vector.broadcast %cst_26 : f32 to vector<4x128xf32>
    %62 = arith.maximumf %60, %61 : vector<4x128xf32>
    %63 = vector.extract_strided_slice %56 {offsets = [0, 128], sizes = [4, 128], strides = [1, 1]} : vector<4x256xf32> to vector<4x128xf32>
    %c81 = arith.constant 81 : index
    %c0_27 = arith.constant 0 : index
    %64 = vector.load %arg4[%c81, %c0_27] : memref<82x128xf32, #tpu.memory_space<vmem>>, vector<1x128xf32>
    %65 = vector.broadcast %64 : vector<1x128xf32> to vector<4x128xf32>
    %66 = arith.addf %63, %65 : vector<4x128xf32>
    %cst_28 = arith.constant 0.000000e+00 : f32
    %67 = vector.broadcast %cst_28 : f32 to vector<4x128xf32>
    %68 = arith.maximumf %66, %67 : vector<4x128xf32>
    %69 = arith.truncf %62 : vector<4x128xf32> to vector<4x128xbf16>
    %c0_29 = arith.constant 0 : index
    %c64 = arith.constant 64 : index
    %70 = vector.load %arg5[%c0_29, %c64] : memref<128x256xbf16, #tpu.memory_space<vmem>>, vector<128x32xbf16>
    %cst_30 = arith.constant dense<0.000000e+00> : vector<4x32xf32>
    %71 = tpu.matmul %69, %70, %cst_30 {dimension_numbers = #tpu.dot_dimension_numbers<[1], [0], [0], [1], [0, 0, 1, 1], [], []>} : vector<4x128xbf16>, vector<128x32xbf16>, vector<4x32xf32> -> vector<4x32xf32>
    %c76 = arith.constant 76 : index
    %c0_31 = arith.constant 0 : index
    %72 = vector.load %arg4[%c76, %c0_31] : memref<82x128xf32, #tpu.memory_space<vmem>>, vector<1x32xf32>
    %73 = vector.broadcast %72 : vector<1x32xf32> to vector<4x32xf32>
    %74 = arith.addf %71, %73 : vector<4x32xf32>
    %75 = arith.truncf %68 : vector<4x128xf32> to vector<4x128xbf16>
    %c0_32 = arith.constant 0 : index
    %c96 = arith.constant 96 : index
    %76 = vector.load %arg5[%c0_32, %c96] : memref<128x256xbf16, #tpu.memory_space<vmem>>, vector<128x32xbf16>
    %cst_33 = arith.constant dense<0.000000e+00> : vector<4x32xf32>
    %77 = tpu.matmul %75, %76, %cst_33 {dimension_numbers = #tpu.dot_dimension_numbers<[1], [0], [0], [1], [0, 0, 1, 1], [], []>} : vector<4x128xbf16>, vector<128x32xbf16>, vector<4x32xf32> -> vector<4x32xf32>
    %c76_34 = arith.constant 76 : index
    %c32 = arith.constant 32 : index
    %78 = vector.load %arg4[%c76_34, %c32] : memref<82x128xf32, #tpu.memory_space<vmem>>, vector<1x32xf32>
    %79 = vector.broadcast %78 : vector<1x32xf32> to vector<4x32xf32>
    %80 = arith.addf %77, %79 : vector<4x32xf32>
    %81 = arith.negf %80 : vector<4x32xf32>
    %82 = math.exp %81 : vector<4x32xf32>
    %cst_35 = arith.constant 1.000000e+00 : f32
    %83 = vector.broadcast %cst_35 : f32 to vector<4x32xf32>
    %84 = arith.addf %83, %82 : vector<4x32xf32>
    %85 = arith.divf %83, %84 : vector<4x32xf32>
    %cst_36 = arith.constant 0.899999976 : f32
    %86 = vector.broadcast %cst_36 : f32 to vector<4x32xf32>
    %87 = arith.mulf %86, %85 : vector<4x32xf32>
    %cst_37 = arith.constant 1.000000e-01 : f32
    %88 = vector.broadcast %cst_37 : f32 to vector<4x32xf32>
    %89 = arith.addf %88, %87 : vector<4x32xf32>
    %c0_38 = arith.constant 0 : index
    %c0_39 = arith.constant 0 : index
    %90 = vector.load %arg6[%c0_38, %c0_39] : memref<4x64xf32, #tpu.memory_space<vmem>>, vector<4x32xf32>
    tpu.vector_store %arg6[%c0_38, %c0_39], %74 {strides = array<i32>} : memref<4x64xf32, #tpu.memory_space<vmem>>, vector<4x32xf32>,
    %c0_40 = arith.constant 0 : index
    %c32_41 = arith.constant 32 : index
    %91 = vector.load %arg6[%c0_40, %c32_41] : memref<4x64xf32, #tpu.memory_space<vmem>>, vector<4x32xf32>
    tpu.vector_store %arg6[%c0_40, %c32_41], %89 {strides = array<i32>} : memref<4x64xf32, #tpu.memory_space<vmem>>, vector<4x32xf32>,
    %92 = vector.extract_strided_slice %4 {offsets = [16, 128], sizes = [10, 128], strides = [1, 1]} : vector<26x256xf32> to vector<10x128xf32>
    %c79 = arith.constant 79 : index
    %c0_42 = arith.constant 0 : index
    %93 = vector.load %arg4[%c79, %c0_42] : memref<82x128xf32, #tpu.memory_space<vmem>>, vector<1x128xf32>
    %94 = vector.broadcast %93 : vector<1x128xf32> to vector<10x128xf32>
    %95 = arith.addf %92, %94 : vector<10x128xf32>
    %cst_43 = arith.constant 0.000000e+00 : f32
    %96 = vector.broadcast %cst_43 : f32 to vector<10x128xf32>
    %97 = arith.maximumf %95, %96 : vector<10x128xf32>
    %98 = arith.truncf %97 : vector<10x128xf32> to vector<10x128xbf16>
    %c1 = arith.constant 1 : index
    %c0_44 = arith.constant 0 : index
    %c0_45 = arith.constant 0 : index
    %99 = vector.load %arg2[%c1, %c0_44, %c0_45] : memref<8x128x128xbf16, #tpu.memory_space<vmem>>, vector<1x128x128xbf16>
    %100 = vector.shape_cast %99 : vector<1x128x128xbf16> to vector<128x128xbf16>
    %cst_46 = arith.constant dense<0.000000e+00> : vector<10x128xf32>
    %101 = tpu.matmul %98, %100, %cst_46 {dimension_numbers = #tpu.dot_dimension_numbers<[1], [0], [0], [1], [0, 0, 1, 1], [], []>} : vector<10x128xbf16>, vector<128x128xbf16>, vector<10x128xf32> -> vector<10x128xf32>
    %c67 = arith.constant 67 : index
    %c0_47 = arith.constant 0 : index
    %102 = vector.load %arg4[%c67, %c0_47] : memref<82x128xf32, #tpu.memory_space<vmem>>, vector<1x128xf32>
    %103 = vector.broadcast %102 : vector<1x128xf32> to vector<10x128xf32>
    %104 = arith.addf %101, %103 : vector<10x128xf32>
    %cst_48 = arith.constant 0.000000e+00 : f32
    %105 = vector.broadcast %cst_48 : f32 to vector<10x128xf32>
    %106 = arith.maximumf %104, %105 : vector<10x128xf32>
    %107 = arith.truncf %106 : vector<10x128xf32> to vector<10x128xbf16>
    %c2 = arith.constant 2 : index
    %c0_49 = arith.constant 0 : index
    %c0_50 = arith.constant 0 : index
    %108 = vector.load %arg2[%c2, %c0_49, %c0_50] : memref<8x128x128xbf16, #tpu.memory_space<vmem>>, vector<1x128x128xbf16>
    %109 = vector.shape_cast %108 : vector<1x128x128xbf16> to vector<128x128xbf16>
    %cst_51 = arith.constant dense<0.000000e+00> : vector<10x128xf32>
    %110 = tpu.matmul %107, %109, %cst_51 {dimension_numbers = #tpu.dot_dimension_numbers<[1], [0], [0], [1], [0, 0, 1, 1], [], []>} : vector<10x128xbf16>, vector<128x128xbf16>, vector<10x128xf32> -> vector<10x128xf32>
    %c68 = arith.constant 68 : index
    %c0_52 = arith.constant 0 : index
    %111 = vector.load %arg4[%c68, %c0_52] : memref<82x128xf32, #tpu.memory_space<vmem>>, vector<1x128xf32>
    %112 = vector.broadcast %111 : vector<1x128xf32> to vector<10x128xf32>
    %113 = arith.addf %110, %112 : vector<10x128xf32>
    %cst_53 = arith.constant 0.000000e+00 : f32
    %114 = vector.broadcast %cst_53 : f32 to vector<10x128xf32>
    %115 = arith.maximumf %113, %114 : vector<10x128xf32>
    %116 = arith.truncf %115 : vector<10x128xf32> to vector<10x128xbf16>
    %c3 = arith.constant 3 : index
    %c0_54 = arith.constant 0 : index
    %c0_55 = arith.constant 0 : index
    %117 = vector.load %arg2[%c3, %c0_54, %c0_55] : memref<8x128x128xbf16, #tpu.memory_space<vmem>>, vector<1x128x128xbf16>
    %118 = vector.shape_cast %117 : vector<1x128x128xbf16> to vector<128x128xbf16>
    %cst_56 = arith.constant dense<0.000000e+00> : vector<10x128xf32>
    %119 = tpu.matmul %116, %118, %cst_56 {dimension_numbers = #tpu.dot_dimension_numbers<[1], [0], [0], [1], [0, 0, 1, 1], [], []>} : vector<10x128xbf16>, vector<128x128xbf16>, vector<10x128xf32> -> vector<10x128xf32>
    %c69 = arith.constant 69 : index
    %c0_57 = arith.constant 0 : index
    %120 = vector.load %arg4[%c69, %c0_57] : memref<82x128xf32, #tpu.memory_space<vmem>>, vector<1x128xf32>
    %121 = vector.broadcast %120 : vector<1x128xf32> to vector<10x128xf32>
    %122 = arith.addf %119, %121 : vector<10x128xf32>
    %cst_58 = arith.constant 0.000000e+00 : f32
    %123 = vector.broadcast %cst_58 : f32 to vector<10x128xf32>
    %124 = arith.maximumf %122, %123 : vector<10x128xf32>
    %125 = arith.truncf %124 : vector<10x128xf32> to vector<10x128xbf16>
    %c4 = arith.constant 4 : index
    %c0_59 = arith.constant 0 : index
    %c0_60 = arith.constant 0 : index
    %126 = vector.load %arg2[%c4, %c0_59, %c0_60] : memref<8x128x128xbf16, #tpu.memory_space<vmem>>, vector<1x128x128xbf16>
    %127 = vector.shape_cast %126 : vector<1x128x128xbf16> to vector<128x128xbf16>
    %cst_61 = arith.constant dense<0.000000e+00> : vector<10x128xf32>
    %128 = tpu.matmul %125, %127, %cst_61 {dimension_numbers = #tpu.dot_dimension_numbers<[1], [0], [0], [1], [0, 0, 1, 1], [], []>} : vector<10x128xbf16>, vector<128x128xbf16>, vector<10x128xf32> -> vector<10x128xf32>
    %c70 = arith.constant 70 : index
    %c0_62 = arith.constant 0 : index
    %129 = vector.load %arg4[%c70, %c0_62] : memref<82x128xf32, #tpu.memory_space<vmem>>, vector<1x128xf32>
    %130 = vector.broadcast %129 : vector<1x128xf32> to vector<10x128xf32>
    %131 = arith.addf %128, %130 : vector<10x128xf32>
    %cst_63 = arith.constant 0.000000e+00 : f32
    %132 = vector.broadcast %cst_63 : f32 to vector<10x128xf32>
    %133 = arith.maximumf %131, %132 : vector<10x128xf32>
    %134 = arith.truncf %133 : vector<10x128xf32> to vector<10x128xbf16>
    %c0_64 = arith.constant 0 : index
    %c32_65 = arith.constant 32 : index
    %135 = vector.load %arg5[%c0_64, %c32_65] : memref<128x256xbf16, #tpu.memory_space<vmem>>, vector<128x32xbf16>
    %cst_66 = arith.constant dense<0.000000e+00> : vector<10x32xf32>
    %136 = tpu.matmul %134, %135, %cst_66 {dimension_numbers = #tpu.dot_dimension_numbers<[1], [0], [0], [1], [0, 0, 1, 1], [], []>} : vector<10x128xbf16>, vector<128x32xbf16>, vector<10x32xf32> -> vector<10x32xf32>
    %c75 = arith.constant 75 : index
    %c0_67 = arith.constant 0 : index
    %137 = vector.load %arg4[%c75, %c0_67] : memref<82x128xf32, #tpu.memory_space<vmem>>, vector<1x32xf32>
    %138 = vector.broadcast %137 : vector<1x32xf32> to vector<10x32xf32>
    %139 = arith.addf %136, %138 : vector<10x32xf32>
    %140 = tpu.iota {dimensions = array<i32: 0>} : vector<2x10xi32>
    %141 = tpu.iota {dimensions = array<i32: 1>} : vector<2x10xi32>
    %c5_i32_68 = arith.constant 5 : i32
    %142 = vector.broadcast %c5_i32_68 : i32 to vector<2x10xi32>
    %143 = arith.muli %140, %142 : vector<2x10xi32>
    %144 = arith.cmpi sge, %141, %143 : vector<2x10xi32>
    %c1_i32 = arith.constant 1 : i32
    %145 = vector.broadcast %c1_i32 : i32 to vector<2x10xi32>
    %146 = arith.addi %140, %145 : vector<2x10xi32>
    %c5_i32_69 = arith.constant 5 : i32
    %147 = vector.broadcast %c5_i32_69 : i32 to vector<2x10xi32>
    %148 = arith.muli %146, %147 : vector<2x10xi32>
    %149 = arith.cmpi slt, %141, %148 : vector<2x10xi32>
    %150 = arith.andi %144, %149 : vector<2x10xi1>
    %cst_70 = arith.constant 2.000000e-01 : f32
    %cst_71 = arith.constant 0.000000e+00 : f32
    %151 = vector.broadcast %cst_70 : f32 to vector<2x10xf32>
    %152 = vector.broadcast %cst_71 : f32 to vector<2x10xf32>
    %153 = arith.select %150, %151, %152 : vector<2x10xi1>, vector<2x10xf32>
    %cst_72 = arith.constant dense<0.000000e+00> : vector<2x32xf32>
    %154 = tpu.matmul %153, %139, %cst_72 {dimension_numbers = #tpu.dot_dimension_numbers<[1], [0], [0], [1], [0, 0, 1, 1], [], []>} : vector<2x10xf32>, vector<10x32xf32>, vector<2x32xf32> -> vector<2x32xf32>
    %155 = vector.extract_strided_slice %74 {offsets = [0, 0], sizes = [2, 32], strides = [1, 1]} : vector<4x32xf32> to vector<2x32xf32>
    %156 = vector.extract_strided_slice %89 {offsets = [0, 0], sizes = [2, 32], strides = [1, 1]} : vector<4x32xf32> to vector<2x32xf32>
    %c0_73 = arith.constant 0 : index
    %c0_74 = arith.constant 0 : index
    %157 = vector.load %arg1[%c0_73, %c0_74] : memref<2x32xf32, #tpu.memory_space<vmem>>, vector<2x32xf32>
    %158 = arith.mulf %156, %157 : vector<2x32xf32>
    %159 = arith.addf %155, %158 : vector<2x32xf32>
    %c0_75 = arith.constant 0 : index
    %c0_76 = arith.constant 0 : index
    %160 = vector.load %arg4[%c0_75, %c0_76] : memref<82x128xf32, #tpu.memory_space<vmem>>, vector<32x128xf32>
    %cst_77 = arith.constant dense<0.000000e+00> : vector<2x128xf32>
    %161 = tpu.matmul %154, %160, %cst_77 {dimension_numbers = #tpu.dot_dimension_numbers<[1], [0], [0], [1], [0, 0, 1, 1], [], []>} : vector<2x32xf32>, vector<32x128xf32>, vector<2x128xf32> -> vector<2x128xf32>
    %c32_78 = arith.constant 32 : index
    %c0_79 = arith.constant 0 : index
    %162 = vector.load %arg4[%c32_78, %c0_79] : memref<82x128xf32, #tpu.memory_space<vmem>>, vector<32x128xf32>
    %cst_80 = arith.constant dense<0.000000e+00> : vector<2x128xf32>
    %163 = tpu.matmul %159, %162, %cst_80 {dimension_numbers = #tpu.dot_dimension_numbers<[1], [0], [0], [1], [0, 0, 1, 1], [], []>} : vector<2x32xf32>, vector<32x128xf32>, vector<2x128xf32> -> vector<2x128xf32>
    %164 = arith.addf %161, %163 : vector<2x128xf32>
    %c65 = arith.constant 65 : index
    %c0_81 = arith.constant 0 : index
    %165 = vector.load %arg4[%c65, %c0_81] : memref<82x128xf32, #tpu.memory_space<vmem>>, vector<1x128xf32>
    %166 = vector.broadcast %165 : vector<1x128xf32> to vector<2x128xf32>
    %167 = arith.addf %164, %166 : vector<2x128xf32>
    %c64_82 = arith.constant 64 : index
    %c0_83 = arith.constant 0 : index
    %168 = vector.load %arg4[%c64_82, %c0_83] : memref<82x128xf32, #tpu.memory_space<vmem>>, vector<1x128xf32>
    %169 = vector.broadcast %1 : vector<8x1xf32> to vector<8x128xf32>
    %170 = vector.broadcast %168 : vector<1x128xf32> to vector<8x128xf32>
    %171 = arith.mulf %169, %170 : vector<8x128xf32>
    %172 = vector.shape_cast %167 : vector<2x128xf32> to vector<2x1x128xf32>
    %173 = vector.shape_cast %171 : vector<8x128xf32> to vector<1x8x128xf32>
    %174 = vector.broadcast %172 : vector<2x1x128xf32> to vector<2x8x128xf32>
    %175 = vector.broadcast %173 : vector<1x8x128xf32> to vector<2x8x128xf32>
    %176 = arith.addf %174, %175 : vector<2x8x128xf32>
    %cst_84 = arith.constant 0.000000e+00 : f32
    %177 = vector.broadcast %cst_84 : f32 to vector<2x8x128xf32>
    %178 = arith.maximumf %176, %177 : vector<2x8x128xf32>
    %179 = vector.shape_cast %178 : vector<2x8x128xf32> to vector<16x128xf32>
    %180 = arith.truncf %179 : vector<16x128xf32> to vector<16x128xbf16>
    %c5 = arith.constant 5 : index
    %c0_85 = arith.constant 0 : index
    %c0_86 = arith.constant 0 : index
    %181 = vector.load %arg2[%c5, %c0_85, %c0_86] : memref<8x128x128xbf16, #tpu.memory_space<vmem>>, vector<1x128x128xbf16>
    %182 = vector.shape_cast %181 : vector<1x128x128xbf16> to vector<128x128xbf16>
    %cst_87 = arith.constant dense<0.000000e+00> : vector<16x128xf32>
    %183 = tpu.matmul %180, %182, %cst_87 {dimension_numbers = #tpu.dot_dimension_numbers<[1], [0], [0], [1], [0, 0, 1, 1], [], []>} : vector<16x128xbf16>, vector<128x128xbf16>, vector<16x128xf32> -> vector<16x128xf32>
    %c71 = arith.constant 71 : index
    %c0_88 = arith.constant 0 : index
    %184 = vector.load %arg4[%c71, %c0_88] : memref<82x128xf32, #tpu.memory_space<vmem>>, vector<1x128xf32>
    %185 = vector.broadcast %184 : vector<1x128xf32> to vector<16x128xf32>
    %186 = arith.addf %183, %185 : vector<16x128xf32>
    %cst_89 = arith.constant 0.000000e+00 : f32
    %187 = vector.broadcast %cst_89 : f32 to vector<16x128xf32>
    %188 = arith.maximumf %186, %187 : vector<16x128xf32>
    %189 = arith.truncf %188 : vector<16x128xf32> to vector<16x128xbf16>
    %c6 = arith.constant 6 : index
    %c0_90 = arith.constant 0 : index
    %c0_91 = arith.constant 0 : index
    %190 = vector.load %arg2[%c6, %c0_90, %c0_91] : memref<8x128x128xbf16, #tpu.memory_space<vmem>>, vector<1x128x128xbf16>
    %191 = vector.shape_cast %190 : vector<1x128x128xbf16> to vector<128x128xbf16>
    %cst_92 = arith.constant dense<0.000000e+00> : vector<16x128xf32>
    %192 = tpu.matmul %189, %191, %cst_92 {dimension_numbers = #tpu.dot_dimension_numbers<[1], [0], [0], [1], [0, 0, 1, 1], [], []>} : vector<16x128xbf16>, vector<128x128xbf16>, vector<16x128xf32> -> vector<16x128xf32>
    %c72 = arith.constant 72 : index
    %c0_93 = arith.constant 0 : index
    %193 = vector.load %arg4[%c72, %c0_93] : memref<82x128xf32, #tpu.memory_space<vmem>>, vector<1x128xf32>
    %194 = vector.broadcast %193 : vector<1x128xf32> to vector<16x128xf32>
    %195 = arith.addf %192, %194 : vector<16x128xf32>
    %cst_94 = arith.constant 0.000000e+00 : f32
    %196 = vector.broadcast %cst_94 : f32 to vector<16x128xf32>
    %197 = arith.maximumf %195, %196 : vector<16x128xf32>
    %198 = arith.truncf %197 : vector<16x128xf32> to vector<16x128xbf16>
    %c7 = arith.constant 7 : index
    %c0_95 = arith.constant 0 : index
    %c0_96 = arith.constant 0 : index
    %199 = vector.load %arg2[%c7, %c0_95, %c0_96] : memref<8x128x128xbf16, #tpu.memory_space<vmem>>, vector<1x128x128xbf16>
    %200 = vector.shape_cast %199 : vector<1x128x128xbf16> to vector<128x128xbf16>
    %cst_97 = arith.constant dense<0.000000e+00> : vector<16x128xf32>
    %201 = tpu.matmul %198, %200, %cst_97 {dimension_numbers = #tpu.dot_dimension_numbers<[1], [0], [0], [1], [0, 0, 1, 1], [], []>} : vector<16x128xbf16>, vector<128x128xbf16>, vector<16x128xf32> -> vector<16x128xf32>
    %c73 = arith.constant 73 : index
    %c0_98 = arith.constant 0 : index
    %202 = vector.load %arg4[%c73, %c0_98] : memref<82x128xf32, #tpu.memory_space<vmem>>, vector<1x128xf32>
    %203 = vector.broadcast %202 : vector<1x128xf32> to vector<16x128xf32>
    %204 = arith.addf %201, %203 : vector<16x128xf32>
    %cst_99 = arith.constant 0.000000e+00 : f32
    %205 = vector.broadcast %cst_99 : f32 to vector<16x128xf32>
    %206 = arith.maximumf %204, %205 : vector<16x128xf32>
    %207 = arith.truncf %206 : vector<16x128xf32> to vector<16x128xbf16>
    %c0_100 = arith.constant 0 : index
    %c128 = arith.constant 128 : index
    %208 = vector.load %arg5[%c0_100, %c128] : memref<128x256xbf16, #tpu.memory_space<vmem>>, vector<128x8xbf16>
    %cst_101 = arith.constant dense<0.000000e+00> : vector<16x8xf32>
    %209 = tpu.matmul %207, %208, %cst_101 {dimension_numbers = #tpu.dot_dimension_numbers<[1], [0], [0], [1], [0, 0, 1, 1], [], []>} : vector<16x128xbf16>, vector<128x8xbf16>, vector<16x8xf32> -> vector<16x8xf32>
    %c77 = arith.constant 77 : index
    %c0_102 = arith.constant 0 : index
    %210 = vector.load %arg4[%c77, %c0_102] : memref<82x128xf32, #tpu.memory_space<vmem>>, vector<1x8xf32>
    %211 = vector.broadcast %210 : vector<1x8xf32> to vector<16x8xf32>
    %212 = arith.addf %209, %211 : vector<16x8xf32>
    %213 = tpu.iota {dimensions = array<i32: 1>} : vector<16x8xi32>
    %c4_i32 = arith.constant 4 : i32
    %214 = vector.broadcast %c4_i32 : i32 to vector<16x8xi32>
    %215 = arith.cmpi slt, %213, %214 : vector<16x8xi32>
    %cst_103 = arith.constant 0.000000e+00 : f32
    %216 = vector.broadcast %cst_103 : f32 to vector<16x8xf32>
    %217 = arith.maximumf %212, %216 : vector<16x8xf32>
    %218 = vector.broadcast %cst_103 : f32 to vector<16x8xf32>
    %219 = arith.subf %212, %218 : vector<16x8xf32>
    %220 = arith.cmpf one, %219, %219 : vector<16x8xf32>
    %221 = vector.broadcast %cst_103 : f32 to vector<16x8xf32>
    %222 = arith.addf %212, %221 : vector<16x8xf32>
    %223 = math.absf %219 : vector<16x8xf32>
    %cst_104 = arith.constant 0.000000e+00 : f32
    %224 = vector.broadcast %cst_104 : f32 to vector<16x8xf32>
    %225 = arith.subf %224, %223 : vector<16x8xf32>
    %226 = math.exp %225 : vector<16x8xf32>
    %227 = math.log1p %226 : vector<16x8xf32>
    %228 = arith.addf %217, %227 : vector<16x8xf32>
    %229 = arith.select %220, %222, %228 : vector<16x8xi1>, vector<16x8xf32>
    %cst_105 = arith.constant 0.899999976 : f32
    %230 = vector.broadcast %cst_105 : f32 to vector<16x8xf32>
    %231 = arith.mulf %230, %229 : vector<16x8xf32>
    %cst_106 = arith.constant 1.000000e-01 : f32
    %232 = vector.broadcast %cst_106 : f32 to vector<16x8xf32>
    %233 = arith.addf %232, %231 : vector<16x8xf32>
    %234 = arith.select %215, %212, %233 : vector<16x8xi1>, vector<16x8xf32>
    %c0_107 = arith.constant 0 : index
    %c0_108 = arith.constant 0 : index
    %235 = vector.load %arg7[%c0_107, %c0_108] : memref<16x8xf32, #tpu.memory_space<vmem>>, vector<16x8xf32>
    tpu.vector_store %arg7[%c0_107, %c0_108], %234 {strides = array<i32>} : memref<16x8xf32, #tpu.memory_space<vmem>>, vector<16x8xf32>,
    return
  }
}

</mosaic_0001>

<bundles_post_ra>
// kernel: tpu_custom_call.1
= control target key start
LH: loop header
LB: loop body
LE: loop exit
PB: predicated region body
PF: predicated region fallthrough
CT: control target
= control target key end

     0   :  { %13 = vsyncpa [#allocation3], 0  ;;  %s3328_s0 = inlined_call_operand.vmem [shape: f32[26,5], index: 0, kind: input, shape index: {}]   ;;  %s3329_s1 = inlined_call_operand.vmem [shape: f32[2,32], index: 1, kind: input, shape index: {}]   ;;  %s3330_s2 = inlined_call_operand.hbm [shape: bf16[8,128,128], index: 2, kind: input, shape index: {}]   ;;  %s3331_s3 = inlined_call_operand.vmem [shape: bf16[40,256], index: 3, kind: input, shape index: {}]   ;;  %s3332_s4 = inlined_call_operand.hbm [shape: f32[82,128], index: 4, kind: input, shape index: {}]   ;;  %s3333_s5 = inlined_call_operand.hbm [shape: bf16[128,256], index: 5, kind: input, shape index: {}]   ;;  %s3334_s6 = inlined_call_operand.hbm [shape: f32[4,64], index: 6, kind: output, shape index: {0}]   ;;  %s3335_s7 = inlined_call_operand.vmem [shape: f32[16,8], index: 7, kind: output, shape index: {1}]  }
   0x1   :  { %14 = vsyncpa [#allocation6], 0 }
   0x2   :  { %15 = vsyncpa [#allocation4], 0  ;;  %s2908_s24 = smov [#allocation5]   ;;  %s2814_s28 = scalar_lea.hbm %s3332_s4, 1408 }
   0x3   :  { %s39_s25 = sshll.u32 %s2908_s24, 4  ;;  %p2815_p0 = scmp.ne.s32.totalorder %s3332_s4, %s2814_s28  ;;  %s40_s25 = int_to_ptr.vmem [resolvable:$true] %s39_s25 }
   0x4   :  { %p2818_p1 = scmp.lt.u32.totalorder %s2814_s28, %s3332_s4 }
   0x6   :  { %p2820_p2 = pnand %p2818_p1, %p2815_p0 }
   0x8   :  { %2823 = shalt.err (!%p2820_p2)
}
   0x9   :  { %s2824_s10 = scalar_lea.vmem %s40_s25, 1408  ;;  %p2829_p4 = scmp.lt.s32.totalorder %s40_s25, %s40_s25 }
   0xa   :  { %p2825_p3 = scmp.ne.s32.totalorder %s40_s25, %s2824_s10  ;;  %p2830_p5 = scmp.lt.s32.totalorder %s2824_s10, %s2824_s10 }
   0xc   :  { %p2831_p6 = por %p2830_p5, %p2829_p4 }
   0xe   :  { %p2832_p7 = pnand %p2831_p6, %p2825_p3 }
  0x10   :  { %2835 = shalt.err (!%p2832_p7)
}
  0x11   :  { %s2909_s11 = smov 128   ;;  %s2910_s12 = smov 8  }
  0x12   :  { %45 = dma.hbm_to_vmem [thread:$0]  %s3332_s4, 1408, %s40_s25, [#allocation6], %s2909_s11, %s2909_s11, %s2910_s12  }
  0x13   :  { %s2911_s15 = smov [#allocation2]   ;;  %s2836_s19 = scalar_lea.hbm %s3330_s2, 8192 }
  0x14   :  { %s25_s16 = sshll.u32 %s2911_s15, 4  ;;  %p2837_p8 = scmp.ne.s32.totalorder %s3330_s2, %s2836_s19  ;;  %s26_s16 = int_to_ptr.vmem [resolvable:$true] %s25_s16 }
  0x15   :  { %p2840_p9 = scmp.lt.u32.totalorder %s2836_s19, %s3330_s2 }
  0x17   :  { %p2842_p10 = pnand %p2840_p9, %p2837_p8 }
  0x19   :  { %2845 = shalt.err (!%p2842_p10)
}
  0x1a   :  { %s2846_s24 = scalar_lea.vmem %s26_s16, 8192  ;;  %p2851_p12 = scmp.lt.s32.totalorder %s26_s16, %s26_s16 }
  0x1b   :  { %p2847_p11 = scmp.ne.s32.totalorder %s26_s16, %s2846_s24  ;;  %p2852_p13 = scmp.lt.s32.totalorder %s2846_s24, %s2846_s24 }
  0x1d   :  { %p2853_p0 = por %p2852_p13, %p2851_p12 }
  0x1f   :  { %p2854_p1 = pnand %p2853_p0, %p2847_p11 }
  0x21   :  { %2857 = shalt.err (!%p2854_p1)
}
  0x22   :  { %s2912_s4 = smov 64   ;;  %s2913_s25 = smov 4  }
  0x23   :  { %31 = dma.hbm_to_vmem [thread:$0]  %s3330_s2, 8192, %s26_s16, [#allocation3], %s2912_s4, %s2912_s4, %s2913_s25  }
  0x24   :  { %s2914_s28 = smov [#allocation7]   ;;  %s2858_s9 = scalar_lea.hbm %s3333_s5, 2048 }
  0x25   :  { %s51_s29 = sshll.u32 %s2914_s28, 4  ;;  %p2859_p2 = scmp.ne.s32.totalorder %s3333_s5, %s2858_s9  ;;  %s52_s29 = int_to_ptr.vmem [resolvable:$true] %s51_s29 }
  0x26   :  { %p2862_p3 = scmp.lt.u32.totalorder %s2858_s9, %s3333_s5 }
  0x28   :  { %p2864_p4 = pnand %p2862_p3, %p2859_p2 }
  0x2a   :  { %2867 = shalt.err (!%p2864_p4)
}
  0x2b   :  { %s2868_s17 = scalar_lea.vmem %s52_s29, 2048  ;;  %p2873_p6 = scmp.lt.s32.totalorder %s52_s29, %s52_s29 }
  0x2c   :  { %p2869_p5 = scmp.ne.s32.totalorder %s52_s29, %s2868_s17  ;;  %p2874_p7 = scmp.lt.s32.totalorder %s2868_s17, %s2868_s17 }
  0x2e   :  { %p2875_p8 = por %p2874_p7, %p2873_p6 }
  0x30   :  { %p2876_p9 = pnand %p2875_p8, %p2869_p5 }
  0x32   :  { %2879 = shalt.err (!%p2876_p9)
}
  0x33   :  { %57 = dma.hbm_to_vmem [thread:$0]  %s3333_s5, 2048, %s52_s29, [#allocation6], %s2909_s11, %s2909_s11, %s2910_s12  }
  0x34   :  { %2902 = dma.done.wait [#allocation3], 8192  }
  0x35   :  { %2903 = vsyncadd [#allocation3], 4294959104 }
  0x36   :  { %2904 = dma.done.wait [#allocation6], 3456  }
  0x37   :  { %2905 = vsyncadd [#allocation6], 4294963840  ;;  %vm87_vm0 = vcmask 1041408   ;;  %v2915_v0 = vmov 0   ;;  %v2916_v1 = vmov 0.0   ;;  %vm88_vm1 = vcmask 1042432  }
  0x38   :  { %129 = vmatprep.mubr.bf16.mxu0 %v2915_v0  ;;  %2371 = vmatprep.subr.bf16.mxu1 %v2916_v1  ;;  %v2917_v2 = vmov 65535   ;;  %v74_v4 = vld [vmem:[%s3331_s3] sm:$0x77]  ;;  %v69_v10 = vld [vmem:[%s3328_s0 + $0x8] sm:$0xff]  ;;  %vm80_vm2 = vcmask 39936   ;;  %v2709_v15 = vld [vmem:[#allocation2 + $0x10] sm:$0xff]  }
  0x39   :  { %2703 = vset.pattern.permute.xlu1 %v2915_v0  ;;  %2704 = vset.pattern.permute.xlu0 %v2915_v0  ;;  %v89_v3 = vsel %vm87_vm0, 4294967295, %v2917_v2  ;;  %v68_v6 = vld [vmem:[%s3328_s0] sm:$0xff]  ;;  %v2117_v7 = vcombine.high %v74_v4, %v74_v4  ;;  %v2116_v8 = vcombine.low %v74_v4, %v74_v4  ;;  %v2708_v13 = vld [vmem:[#allocation2 + $0x8] sm:$0xff]   ;;  %v2710_v16 = vld [vmem:[#allocation2 + $0x18] sm:$0xff]   ;;  %vm2918_vm3 = vmmov 0   ;;  %s2921_s9 = smov 96  }
  0x3a   :  { %v90_v5 = vsel %vm88_vm1, %v89_v3, 0  ;;  %v2707_v9 = vld [vmem:[#allocation2] sm:$0xff]   ;;  %v72_v14 = vpack.c.bf16 %v69_v10, %v68_v6  ;;  %v2712_v18 = vld [vmem:[#allocation2 + $0x28] sm:$0xff]   ;;  %v2713_v19 = vld [vmem:[#allocation2 + $0x30] sm:$0xff]   ;;  %2387 = vmatprep.mubr.msk.bf16.mxu1 %vm2918_vm3, %v2916_v1  ;;  %v2919_v62 = vmov 0.0|0.0   ;;  %v379_v4 = vlaneseq }
  0x3b   :  { %v95_v11 = vand.u32 %v2117_v7, %v90_v5  ;;  %v92_v12 = vand.u32 %v2116_v8, %v90_v5  ;;  %2372 = vmatpush3.bf16.msra.mxu1 %v2707_v9  ;;  %v2711_v17 = vld [vmem:[#allocation2 + $0x20] sm:$0xff]   ;;  %v2714_v20 = vld [vmem:[#allocation2 + $0x38] sm:$0xff]   ;;  %v70_v23 = vld [vmem:[%s3328_s0 + $0x10] sm:$0xff]  ;;  %vm397_vm10 = vcmask 130048   ;;  %vm496_vm11 = vcmask 261120  }
  0x3c   :  { %2373 = vmatprep.subr.bf16.mxu1 %v2916_v1  ;;  %v3035_v21 = vld [vmem:[#allocation7] ss:$8 sps:$4 sm:$0xff]   ;;  %v3043_v24 = vld [vmem:[#allocation7 + $0x10] ss:$8 sps:$4 sm:$0xff]   ;;  %v2120_v30 = vld [vmem:[#allocation5 + $0x4e] ss:$0 sm:$0xff] }
  0x3d   :  { %97 = vmatprep.subr.bf16.mxu0 %v95_v11  ;;  %v3037_v22 = vld [vmem:[#allocation7 + $0x20] ss:$8 sps:$4 sm:$0xff]   ;;  %561 = vrot.lane.b32.xlu0 %v3035_v21, %s2912_s4  ;;  %v3055_v27 = vld [vmem:[#allocation7 + $0x30] ss:$8 sps:$4 sm:$0xff]   ;;  %v2150_v44 = vld [vmem:[#allocation5 + $0x4f] ss:$0 sm:$0xff] }
  0x3e   :  { %98 = vmatpush1.bf16.msra.mxu0 %v92_v12  ;;  %v71_v25 = vld [vmem:[%s3328_s0 + $0x18] sm:$0x3]  ;;  %565 = vrot.lane.b32.xlu1 %v3037_v22, %s2912_s4  ;;  %v3067_v29 = vld [vmem:[#allocation7 + $0x50] ss:$8 sps:$4 sm:$0xff]   ;;  %v2121_v52 = vld [vmem:[#allocation5 + $0x42] ss:$0 sm:$0xff] }
  0x3f   :  { %2374 = vmatpush3.bf16.msra.mxu1 %v2708_v13  ;;  %2391 = vmatprep.subr.bf16.mxu0 %v2916_v1  ;;  %v73_v26 = vpack.c.bf16 %v71_v25, %v70_v23  ;;  %v3064_v28 = vld [vmem:[#allocation7 + $0x40] ss:$8 sps:$4 sm:$0xff]   ;;  %v3088_v41 = vld [vmem:[#allocation7 + $0x70] ss:$8 sps:$4 sm:$0xff]   ;;  %v2725_v2 = vld [vmem:[%s3331_s3 + $0xc] ss:$8 sps:$4 sm:$0xff]  }
  0x40   :  { %2375 = vmatprep.subr.bf16.mxu1 %v2916_v1  ;;  %v3082_v40 = vld [vmem:[#allocation7 + $0x60] ss:$8 sps:$4 sm:$0xff]   ;;  %v2723_v63 = vld [vmem:[%s3331_s3 + $0x8] ss:$8 sps:$4 sm:$0xff]   ;;  %v2728_v3 = vld [vmem:[%s3331_s3 + $0x1c] ss:$8 sps:$4 sm:$0xff]  }
  0x41   :  { %2118 = vmatmul.mubr.msk.bf16.vlgmr.msra.gmra.mrb[0].mxu0 %vm80_vm2, %v72_v14  ;;  %563 = vrot.lane.b32.xlu0 %v3043_v24, %s2912_s4  ;;  %v3110_v5 = vshrl.u32 %v379_v4, 7  ;;  %v3117_v9 = vand.u32 127, %v379_v4  ;;  %v2130_v12 = vld [vmem:[#allocation5 + $0x4a] ss:$0 sm:$0xff]  ;;  %v2735_v4 = vld [vmem:[#allocation2 + $0x70] sm:$0xff]   ;;  %vm702_vm12 = vcmask 257024  }
  0x42   :  { %137 = vmatprep.mubr.bf16.mxu0 %v2915_v0  ;;  %2392 = vmatpush3.bf16.msra.mxu0 %v3035_v21  ;;  %vm708_vm13 = vcmask 519424   ;;  %vm2922_vm1 = vmmov 1  }
  0x43   :  { %2376 = vmatpush3.bf16.msra.mxu1 %v2709_v15  ;;  %2393 = vmatprep.subr.bf16.mxu0 %v2916_v1  ;;  %v2139_v6 = vadd.s32 4294967294, %v3110_v5  ;;  %vm383_vm4 = vcmp.lt.s32.totalorder %v3110_v5, 2 }
  0x44   :  { %2377 = vmatprep.subr.bf16.mxu1 %v2916_v1  ;;  %567 = vrot.lane.b32.xlu1 %v3055_v27, %s2912_s4 }
  0x45   :  { %569 = vrot.lane.b32.xlu0 %v3064_v28, %s2912_s4  ;;  %v385_v7 = vsel %vm383_vm4, %v3110_v5, %v2139_v6  ;;  %v2736_v6 = vld [vmem:[#allocation2 + $0x78] sm:$0xff]  }
  0x46   :  { %2394 = vmatpush3.bf16.msra.mxu0 %v3043_v24  ;;  %v386_v8 = vmul.u32 8, %v385_v7  ;;  %v2741_v7 = vld [vmem:[#allocation2 + $0x80] sm:$0xff]  }
  0x47   :  { %2378 = vmatpush3.bf16.msra.mxu1 %v2710_v16  ;;  %2395 = vmatprep.subr.bf16.mxu0 %v2916_v1 }
  0x48   :  { %2379 = vmatprep.subr.bf16.mxu1 %v2916_v1  ;;  %571 = vrot.lane.b32.xlu1 %v3067_v29, %s2912_s4  ;;  %v388_v10 = vadd.s32 8, %v386_v8  ;;  %v392_v11 = vadd.s32 5, %v386_v8  ;;  %vm387_vm5 = vcmp.ge.s32.totalorder %v3117_v9, %v386_v8  ;;  %v2742_v8 = vld [vmem:[#allocation2 + $0x88] sm:$0xff]  }
  0x49   :  { %2119 = vmatmul.mubr.msk.bf16.gmra.mrb[4].mxu0 %vm80_vm2, %v73_v26  ;;  %573 = vrot.lane.b32.xlu0 %v3082_v40, %s2912_s4  ;;  %vm2672_vm2 = vmpackc.low %vm87_vm0, %vm2922_vm1 }
  0x4a   :  { %2407 = vmatprep.mubr.msk.bf16.mxu0 %vm2918_vm3, %v2916_v1  ;;  %2396 = vmatpush3.bf16.msra.mxu0 %v3037_v22  ;;  %vm389_vm6 = vcmp.lt.s32.totalorder %v3117_v9, %v388_v10  ;;  %vm393_vm8 = vcmp.lt.s32.totalorder %v3117_v9, %v392_v11  ;;  %v2743_v10 = vld [vmem:[#allocation2 + $0x90] sm:$0xff]   ;;  %v2744_v11 = vld [vmem:[#allocation2 + $0x98] sm:$0xff]  }
  0x4b   :  { %2380 = vmatpush3.bf16.msra.mxu1 %v2711_v17  ;;  %2397 = vmatprep.subr.bf16.mxu0 %v2916_v1  ;;  %vm390_vm7 = vmand %vm387_vm5, %vm389_vm6  ;;  %vm1309_vm5 = vcmask 80896  }
  0x4c   :  { %2381 = vmatprep.subr.bf16.mxu1 %v2916_v1  ;;  %575 = vrot.lane.b32.xlu1 %v3088_v41, %s2912_s4  ;;  %vm394_vm9 = vmand %vm390_vm7, %vm393_vm8 }
  0x4e   :  { %2398 = vmatpush3.bf16.msra.mxu0 %v3055_v27 }
  0x4f   :  { %2382 = vmatpush3.bf16.msra.mxu1 %v2712_v18  ;;  %2399 = vmatprep.subr.bf16.mxu0 %v2916_v1 }
  0x50   :  { %2383 = vmatprep.subr.bf16.mxu1 %v2916_v1 }
  0x52   :  { %2400 = vmatpush3.bf16.msra.mxu0 %v3064_v28 }
  0x53   :  { %2384 = vmatpush3.bf16.msra.mxu1 %v2713_v19  ;;  %2401 = vmatprep.subr.bf16.mxu0 %v2916_v1  ;;  %v391_v19 = vsel %vm390_vm7, 0.125, %v2916_v1 }
  0x54   :  { %2385 = vmatprep.subr.bf16.mxu1 %v2916_v1 }
  0x56   :  { %2402 = vmatpush3.bf16.msra.mxu0 %v3067_v29 }
  0x57   :  { %2386 = vmatpush3.bf16.msra.mxu1 %v2714_v20  ;;  %2403 = vmatprep.subr.bf16.mxu0 %v2916_v1  ;;  %v395_v20 = vsel %vm394_vm9, 0.2, %v2916_v1 }
  0x58   :  { %2667 = vmatprep.subr.bf16.mxu1 %v2919_v62  ;;  %v396_v25 = vsel %vm383_vm4, %v391_v19, %v395_v20 }
  0x5a   :  { %2404 = vmatpush3.bf16.msra.mxu0 %v3082_v40 }
  0x5b   :  { %2405 = vmatprep.subr.bf16.mxu0 %v2916_v1 }
  0x5e   :  { %2406 = vmatpush3.bf16.msra.mxu0 %v3088_v41 }
  0x5f   :  { %500 = vmatprep.subr.bf16.mxu0 %v2725_v2  ;;  %v2732_v2 = vld [vmem:[#allocation2 + $0x58] sm:$0xff]  }
  0xaf   :  { %v562_v26 = vpop.permute.xlu0 %561 }
 0x114   :  { %v131_v31 = vpop.f32.mrb[0].mxu0 }
 0x115   :  { %v151_v32 = vadd.f32 %v2120_v30, %v131_v31  ;;  %v133_v33 = vpop.f32.mrb[1].mxu0  ;;  %v566_v31 = vpop.permute.xlu1 %565 }
 0x116   :  { %v134_v34 = vpop.f32.mrb[2].mxu0 }
 0x117   :  { %v152_v35 = vadd.f32 %v2120_v30, %v134_v34  ;;  %v136_v36 = vpop.f32.mrb[3].mxu0  ;;  %v153_v37 = vmax.f32 %v151_v32, 0.0  ;;  %v564_v30 = vpop.permute.xlu0 %563 }
 0x119   :  { %v154_v38 = vmax.f32 %v152_v35, 0.0 }
 0x11b   :  { %v155_v39 = vpack.c.bf16 %v154_v38, %v153_v37 }
 0x11c   :  { %v139_v42 = vpop.f32.mrb[4].mxu0 }
 0x11d   :  { %2388 = vmatmul.mubr.bf16.vlgmr.msra.gmra.mrb[0].mxu1 %v155_v39  ;;  %v140_v43 = vpop.f32.mrb[5].mxu0  ;;  %v2737_v42 = vld [vmem:[#allocation7] ss:$8 sps:$4 sm:$0xff]  }
 0x11e   :  { %2415 = vmatprep.mubr.msk.f32.mxu1 %vm2918_vm3, %v2916_v1  ;;  %v715_v45 = vadd.f32 %v2150_v44, %v140_v43  ;;  %v142_v46 = vpop.f32.mrb[6].mxu0  ;;  %v2738_v43 = vld [vmem:[#allocation7 + $0x20] ss:$8 sps:$4 sm:$0xff]  }
 0x11f   :  { %v143_v47 = vpop.f32.mrb[7].mxu0  ;;  %v3168_v46 = vld [vmem:[#allocation5 + $0x4c] ss:$0 sm:$0xff] }
 0x120   :  { %v717_v48 = vmax.f32 %v715_v45, 0.0  ;;  %v716_v49 = vadd.f32 %v2150_v44, %v143_v47  ;;  %v2739_v44 = vld [vmem:[#allocation7 + $0x40] ss:$8 sps:$4 sm:$0xff]   ;;  %v2146_v47 = vld [vmem:[#allocation5 + $0x50] ss:$0 sm:$0xff] }
 0x121   :  { %v2740_v45 = vld [vmem:[#allocation7 + $0x60] ss:$8 sps:$4 sm:$0xff]  }
 0x122   :  { %v718_v50 = vmax.f32 %v716_v49, 0.0 }
 0x124   :  { %v3093_v51 = vpack.c.bf16 %v718_v50, %v717_v48  ;;  %v2147_v48 = vld [vmem:[#allocation5 + $0x51] ss:$0 sm:$0xff] }
 0x1f0   :  { %v259_v53 = vpop.f32.mrb[0].mxu1 }
 0x1f1   :  { %v260_v54 = vadd.f32 %v2121_v52, %v259_v53  ;;  %v2389_v55 = vpop.f32.mrb[1].mxu1 }
 0x1f2   :  { %v262_v56 = vpop.f32.mrb[2].mxu1 }
 0x1f3   :  { %v263_v57 = vadd.f32 %v2121_v52, %v262_v56  ;;  %v2390_v58 = vpop.f32.mrb[3].mxu1  ;;  %v266_v59 = vmax.f32 %v260_v54, 0.0 }
 0x1f4   :  { %v2729_v58 = vld [vmem:[#allocation2 + $0x40] sm:$0xff]  }
 0x1f5   :  { %v267_v60 = vmax.f32 %v263_v57, 0.0 }
 0x1f7   :  { %v268_v61 = vpack.c.bf16 %v267_v60, %v266_v59 }
 0x1f9   :  { %2408 = vmatmul.mubr.bf16.vlgmr.msra.gmra.mrb[8].mxu0 %v268_v61  ;;  %v2730_v61 = vld [vmem:[#allocation2 + $0x48] sm:$0xff]  }
 0x1fa   :  { %532 = vmatprep.mubr.bf16.mxu0 %v2915_v0  ;;  %501 = vmatpush1.bf16.msra.mxu0 %v2723_v63  ;;  %v2726_v0 = vld [vmem:[%s3331_s3 + $0x18] ss:$8 sps:$4 sm:$0xff]   ;;  %s2920_s3 = smov 32   ;;  %v2731_v63 = vld [vmem:[#allocation2 + $0x50] sm:$0xff]  }
 0x1fb   :  { %502 = vmatprep.subr.bf16.mxu0 %v2728_v3  ;;  %626 = vrot.lane.b32.xlu0 %v3035_v21, %s2920_s3  ;;  %v568_v21 = vpop.permute.xlu1 %567  ;;  %v2733_v3 = vld [vmem:[#allocation2 + $0x60] sm:$0xff]  }
 0x1fc   :  { %628 = vrot.lane.b32.xlu1 %v3043_v24, %s2920_s3 }
 0x1fe   :  { %503 = vmatpush1.bf16.msra.mxu0 %v2726_v0  ;;  %v2734_v0 = vld [vmem:[#allocation2 + $0x68] sm:$0xff]  }
 0x1ff   :  { %2438 = vmatprep.subr.bf16.mxu0 %v2916_v1  ;;  %630 = vrot.lane.b32.xlu0 %v3037_v22, %s2920_s3  ;;  %v570_v22 = vpop.permute.xlu0 %569  ;;  %v572_v24 = vpop.permute.xlu1 %571 }
 0x200   :  { %632 = vrot.lane.b32.xlu1 %v3055_v27, %s2920_s3 }
 0x203   :  { %634 = vrot.lane.b32.xlu0 %v3064_v28, %s2920_s3  ;;  %v574_v27 = vpop.permute.xlu0 %573  ;;  %v576_v28 = vpop.permute.xlu1 %575 }
 0x204   :  { %636 = vrot.lane.b32.xlu1 %v3067_v29, %s2920_s3 }
 0x207   :  { %638 = vrot.lane.b32.xlu0 %v3082_v40, %s2920_s3 }
 0x208   :  { %640 = vrot.lane.b32.xlu1 %v3088_v41, %s2920_s3 }
 0x20b   :  { %1237 = vrot.lane.b32.xlu0 %v2737_v42, %s2921_s9 }
 0x20f   :  { %1241 = vrot.lane.b32.xlu0 %v2738_v43, %s2921_s9 }
 0x213   :  { %1245 = vrot.lane.b32.xlu0 %v2739_v44, %s2921_s9 }
 0x217   :  { %1249 = vrot.lane.b32.xlu0 %v2740_v45, %s2921_s9 }
 0x21b   :  { %651 = vrot.lane.b32.xlu0 %v3168_v46, %s2921_s9 }
 0x26d   :  { %v627_v34 = vpop.permute.xlu0 %626 }
 0x26e   :  { %v629_v35 = vpop.permute.xlu1 %628 }
 0x271   :  { %v631_v36 = vpop.permute.xlu0 %630 }
 0x272   :  { %v633_v37 = vpop.permute.xlu1 %632 }
 0x275   :  { %v635_v38 = vpop.permute.xlu0 %634 }
 0x276   :  { %v637_v39 = vpop.permute.xlu1 %636 }
 0x279   :  { %v639_v40 = vpop.permute.xlu0 %638 }
 0x27a   :  { %v641_v41 = vpop.permute.xlu1 %640 }
 0x2cc   :  { %v372_v13 = vpop.f32.mrb[8].mxu0 }
 0x2cd   :  { %v2409_v14 = vpop.f32.mrb[9].mxu0  ;;  %v373_v16 = vadd.f32 %v2130_v12, %v372_v13  ;;  %v2747_v13 = vld [vmem:[#allocation2 + $0xb0] sm:$0xff]  }
 0x2ce   :  { %v375_v15 = vpop.f32.mrb[10].mxu0  ;;  %v2748_v14 = vld [vmem:[#allocation2 + $0xb8] sm:$0xff]  }
 0x2cf   :  { %v376_v17 = vadd.f32 %v2130_v12, %v375_v15  ;;  %v2410_v18 = vpop.f32.mrb[11].mxu0  ;;  %v2745_v12 = vld [vmem:[#allocation2 + $0xa0] sm:$0xff]   ;;  %v3195_v15 = vpop.permute.xlu0 %1237 }
 0x2d1   :  { %v2668_v23 = vpack.c.bf16 %v376_v17, %v373_v16 }
 0x2d3   :  { %2669 = vmatpush3.bf16.msra.mxu1 %v2668_v23  ;;  %v3197_v16 = vpop.permute.xlu0 %1241 }
 0x2d4   :  { %2418 = vmatprep.subr.bf16.mxu1 %v2916_v1 }
 0x2d6   :  { %2416 = vmatmul.mubr.msk.f32.vlgmr.msra.gmra.mrb[4].mxu1 %vm397_vm10, %v396_v25 }
 0x2d7   :  { %2434 = vmatprep.mubr.msk.bf16.mxu1 %vm2918_vm3, %v2916_v1  ;;  %2419 = vmatpush3.bf16.msra.mxu1 %v562_v26  ;;  %v3199_v17 = vpop.permute.xlu0 %1245 }
 0x2d8   :  { %2420 = vmatprep.subr.bf16.mxu1 %v2916_v1 }
 0x2db   :  { %2421 = vmatpush3.bf16.msra.mxu1 %v564_v30  ;;  %v3201_v18 = vpop.permute.xlu0 %1249 }
 0x2dc   :  { %2422 = vmatprep.subr.bf16.mxu1 %v2916_v1 }
 0x2df   :  { %2423 = vmatpush3.bf16.msra.mxu1 %v566_v31  ;;  %v652_v19 = vpop.permute.xlu0 %651 }
 0x2e0   :  { %2424 = vmatprep.subr.bf16.mxu1 %v2916_v1 }
 0x2e3   :  { %2425 = vmatpush3.bf16.msra.mxu1 %v568_v21 }
 0x2e4   :  { %2426 = vmatprep.subr.bf16.mxu1 %v2916_v1 }
 0x2e7   :  { %2427 = vmatpush3.bf16.msra.mxu1 %v570_v22 }
 0x2e8   :  { %2428 = vmatprep.subr.bf16.mxu1 %v2916_v1 }
 0x2eb   :  { %2429 = vmatpush3.bf16.msra.mxu1 %v572_v24 }
 0x2ec   :  { %2430 = vmatprep.subr.bf16.mxu1 %v2916_v1 }
 0x2ef   :  { %2431 = vmatpush3.bf16.msra.mxu1 %v574_v27 }
 0x2f0   :  { %2432 = vmatprep.subr.bf16.mxu1 %v2916_v1 }
 0x2f3   :  { %2433 = vmatpush3.bf16.msra.mxu1 %v576_v28 }
 0x2f4   :  { %2458 = vmatprep.subr.bf16.mxu1 %v2916_v1 }
 0x3a9   :  { %v467_v29 = vpop.f32.mrb[4].mxu1 }
 0x3aa   :  { %v471_v32 = vpack.c.bf16 %v467_v29, %v467_v29  ;;  %v2417_v33 = vpop.f32.mrb[5].mxu1 }
 0x3ab   :  { %v2749_v33 = vld [vmem:[#allocation2 + $0xc0] sm:$0xff]  }
 0x3ac   :  { %2145 = vmatmul.mubr.msk.bf16.vlgmr.msra.gmra.mrb[12].mxu0 %vm496_vm11, %v471_v32 }
 0x3ad   :  { %2439 = vmatpush3.bf16.msra.mxu0 %v627_v34  ;;  %2454 = vmatprep.mubr.msk.bf16.mxu0 %vm2918_vm3, %v2916_v1  ;;  %v2750_v34 = vld [vmem:[#allocation2 + $0xc8] sm:$0xff]  }
 0x3ae   :  { %2440 = vmatprep.subr.bf16.mxu0 %v2916_v1 }
 0x3b1   :  { %2441 = vmatpush3.bf16.msra.mxu0 %v629_v35  ;;  %v2751_v35 = vld [vmem:[#allocation2 + $0xd0] sm:$0xff]  }
 0x3b2   :  { %2442 = vmatprep.subr.bf16.mxu0 %v2916_v1 }
 0x3b5   :  { %2443 = vmatpush3.bf16.msra.mxu0 %v631_v36 }
 0x3b6   :  { %2444 = vmatprep.subr.bf16.mxu0 %v2916_v1 }
 0x3b9   :  { %2445 = vmatpush3.bf16.msra.mxu0 %v633_v37  ;;  %v2151_v37 = vld [vmem:[#allocation5 + $0x43] ss:$0 sm:$0xff] }
 0x3ba   :  { %2446 = vmatprep.subr.bf16.mxu0 %v2916_v1 }
 0x3bd   :  { %2447 = vmatpush3.bf16.msra.mxu0 %v635_v38 }
 0x3be   :  { %2448 = vmatprep.subr.bf16.mxu0 %v2916_v1 }
 0x3c1   :  { %2449 = vmatpush3.bf16.msra.mxu0 %v637_v39  ;;  %v2752_v39 = vld [vmem:[#allocation2 + $0xd8] sm:$0xff]  }
 0x3c2   :  { %2450 = vmatprep.subr.bf16.mxu0 %v2916_v1 }
 0x3c5   :  { %2451 = vmatpush3.bf16.msra.mxu0 %v639_v40  ;;  %v1386_v40 = vld [vmem:[%s3329_s1] sm:$0x3] }
 0x3c6   :  { %2452 = vmatprep.subr.bf16.mxu0 %v2916_v1 }
 0x3c9   :  { %2453 = vmatpush3.bf16.msra.mxu0 %v641_v41 }
 0x3ca   :  { %2478 = vmatprep.subr.bf16.mxu0 %v2916_v1 }
 0x47f   :  { %v534_v49 = vpop.f32.mrb[12].mxu0 }
 0x480   :  { %v546_v50 = vadd.f32 %v2146_v47, %v534_v49  ;;  %v536_v52 = vpop.f32.mrb[13].mxu0  ;;  %v2753_v47 = vld [vmem:[#allocation2 + $0xe0] sm:$0xff]  }
 0x481   :  { %v553_v53 = vadd.f32 %v2147_v48, %v536_v52  ;;  %v538_v54 = vpop.f32.mrb[14].mxu0 }
 0x482   :  { %v547_v55 = vmax.f32 %v546_v50, 0.0  ;;  %v539_v56 = vpop.f32.mrb[15].mxu0  ;;  %v2754_v54 = vld [vmem:[#allocation2 + $0xe8] sm:$0xff]  }
 0x483   :  { %v554_v57 = vmax.f32 %v553_v53, 0.0  ;;  %v2755_v56 = vld [vmem:[#allocation2 + $0xf0] sm:$0xff]  }
 0x484   :  { %v555_v59 = vpack.c.bf16 %v547_v55, %v547_v55 }
 0x485   :  { %v625_v60 = vpack.c.bf16 %v554_v57, %v554_v57  ;;  %v2756_v57 = vld [vmem:[#allocation2 + $0xf8] sm:$0xff]  }
 0x486   :  { %2435 = vmatmul.mubr.bf16.vlgmr.msra.gmra.mrb[8].mxu1 %v555_v59  ;;  %v2758_v59 = vld [vmem:[#allocation2 + $0x108] sm:$0xff]  }
 0x487   :  { %2459 = vmatpush3.bf16.msra.mxu1 %v2729_v58  ;;  %2455 = vmatmul.mubr.bf16.vlgmr.msra.gmra.mrb[16].mxu0 %v625_v60  ;;  %v2757_v58 = vld [vmem:[#allocation2 + $0x100] sm:$0xff]   ;;  %v2759_v60 = vld [vmem:[#allocation2 + $0x110] sm:$0xff]  }
 0x488   :  { %2460 = vmatprep.subr.bf16.mxu1 %v2916_v1  ;;  %2474 = vmatprep.mubr.msk.bf16.mxu1 %vm2918_vm3, %v2916_v1 }
 0x489   :  { %2494 = vmatprep.mubr.msk.bf16.mxu0 %vm2918_vm3, %v2916_v1  ;;  %2479 = vmatpush3.bf16.msra.mxu0 %v2741_v7 }
 0x48a   :  { %2480 = vmatprep.subr.bf16.mxu0 %v2916_v1 }
 0x48b   :  { %2461 = vmatpush3.bf16.msra.mxu1 %v2730_v61  ;;  %v2760_v61 = vld [vmem:[#allocation2 + $0x118] sm:$0xff]  }
 0x48c   :  { %2462 = vmatprep.subr.bf16.mxu1 %v2916_v1 }
 0x48d   :  { %2481 = vmatpush3.bf16.msra.mxu0 %v2742_v8 }
 0x48e   :  { %2482 = vmatprep.subr.bf16.mxu0 %v2916_v1 }
 0x48f   :  { %2463 = vmatpush3.bf16.msra.mxu1 %v2731_v63  ;;  %v2761_v63 = vld [vmem:[#allocation2 + $0x120] sm:$0xff]  }
 0x490   :  { %2464 = vmatprep.subr.bf16.mxu1 %v2916_v1 }
 0x491   :  { %2483 = vmatpush3.bf16.msra.mxu0 %v2743_v10 }
 0x492   :  { %2484 = vmatprep.subr.bf16.mxu0 %v2916_v1 }
 0x493   :  { %2465 = vmatpush3.bf16.msra.mxu1 %v2732_v2 }
 0x494   :  { %2466 = vmatprep.subr.bf16.mxu1 %v2916_v1 }
 0x495   :  { %2485 = vmatpush3.bf16.msra.mxu0 %v2744_v11 }
 0x496   :  { %2486 = vmatprep.subr.bf16.mxu0 %v2916_v1 }
 0x497   :  { %2467 = vmatpush3.bf16.msra.mxu1 %v2733_v3  ;;  %v2762_v3 = vld [vmem:[#allocation2 + $0x128] sm:$0xff]  }
 0x498   :  { %2468 = vmatprep.subr.bf16.mxu1 %v2916_v1 }
 0x499   :  { %2487 = vmatpush3.bf16.msra.mxu0 %v2745_v12 }
 0x49a   :  { %2488 = vmatprep.subr.bf16.mxu0 %v2916_v1 }
 0x49b   :  { %2469 = vmatpush3.bf16.msra.mxu1 %v2734_v0  ;;  %v2160_v0 = vld [vmem:[#allocation5 + $0x44] ss:$0 sm:$0xff] }
 0x49c   :  { %2470 = vmatprep.subr.bf16.mxu1 %v2916_v1 }
 0x49f   :  { %2471 = vmatpush3.bf16.msra.mxu1 %v2735_v4 }
 0x4a0   :  { %2472 = vmatprep.subr.bf16.mxu1 %v2916_v1 }
 0x4a3   :  { %2473 = vmatpush3.bf16.msra.mxu1 %v2736_v6 }
 0x4a4   :  { %2498 = vmatprep.subr.bf16.mxu1 %v2916_v1 }
 0x4a6   :  { %2475 = vmatmul.mubr.bf16.vlgmr.msra.gmra.mrb[12].mxu1 %v3093_v51  ;;  %v2746_v51 = vld [vmem:[#allocation2 + $0xa8] sm:$0xff]  }
 0x4a7   :  { %2514 = vmatprep.mubr.msk.bf16.mxu1 %vm2918_vm3, %v2916_v1  ;;  %2489 = vmatpush3.bf16.msra.mxu0 %v2746_v51 }
 0x4a8   :  { %2490 = vmatprep.subr.bf16.mxu0 %v2916_v1  ;;  %2499 = vmatpush3.bf16.msra.mxu1 %v2749_v33 }
 0x4a9   :  { %2500 = vmatprep.subr.bf16.mxu1 %v2916_v1 }
 0x4ab   :  { %2491 = vmatpush3.bf16.msra.mxu0 %v2747_v13 }
 0x4ac   :  { %2492 = vmatprep.subr.bf16.mxu0 %v2916_v1  ;;  %2501 = vmatpush3.bf16.msra.mxu1 %v2750_v34 }
 0x4ad   :  { %2502 = vmatprep.subr.bf16.mxu1 %v2916_v1 }
 0x4af   :  { %2493 = vmatpush3.bf16.msra.mxu0 %v2748_v14  ;;  %v2763_v14 = vld [vmem:[#allocation2 + $0x130] sm:$0xff]  }
 0x4b0   :  { %2518 = vmatprep.subr.bf16.mxu0 %v2916_v1  ;;  %2503 = vmatpush3.bf16.msra.mxu1 %v2751_v35 }
 0x4b1   :  { %2504 = vmatprep.subr.bf16.mxu1 %v2916_v1 }
 0x4b4   :  { %2505 = vmatpush3.bf16.msra.mxu1 %v2752_v39 }
 0x4b5   :  { %2506 = vmatprep.subr.bf16.mxu1 %v2916_v1 }
 0x4b8   :  { %2507 = vmatpush3.bf16.msra.mxu1 %v2753_v47 }
 0x4b9   :  { %2508 = vmatprep.subr.bf16.mxu1 %v2916_v1 }
 0x4bc   :  { %2509 = vmatpush3.bf16.msra.mxu1 %v2754_v54 }
 0x4bd   :  { %2510 = vmatprep.subr.bf16.mxu1 %v2916_v1 }
 0x4c0   :  { %2511 = vmatpush3.bf16.msra.mxu1 %v2755_v56 }
 0x4c1   :  { %2512 = vmatprep.subr.bf16.mxu1 %v2916_v1 }
 0x4c4   :  { %2513 = vmatpush3.bf16.msra.mxu1 %v2756_v57  ;;  %v1393_v57 = vld [vmem:[#allocation5 + $0x20] sm:$0xff] }
 0x4c5   :  { %2538 = vmatprep.subr.bf16.mxu1 %v2916_v1 }
 0x559   :  { %v619_v20 = vpop.f32.mrb[8].mxu1 }
 0x55a   :  { %v620_v23 = vadd.f32 %v3168_v46, %v619_v20  ;;  %v2436_v25 = vpop.f32.mrb[9].mxu1  ;;  %v688_v26 = vpop.f32.mrb[16].mxu0  ;;  %v2765_v20 = vld [vmem:[#allocation7 + $0x10] ss:$8 sps:$4 sm:$0xff]  }
 0x55b   :  { %v689_v30 = vadd.f32 %v688_v26, %v652_v19  ;;  %v622_v31 = vpop.f32.mrb[10].mxu1  ;;  %v2456_v21 = vpop.f32.mrb[17].mxu0  ;;  %v2764_v19 = vld [vmem:[#allocation2 + $0x138] sm:$0xff]   ;;  %1239 = vrot.lane.b32.xlu1 %v2765_v20, %s2921_s9  ;;  %v2768_v25 = vld [vmem:[#allocation7 + $0x70] ss:$8 sps:$4 sm:$0xff]   ;;  %v2813_v26 = vld [vmem:[%s3328_s0] sm:$0xff] }
 0x55c   :  { %703 = vst.msk [vmem:[#allocation8] sm:$0xf] %vm702_vm12, %v620_v23  ;;  %v2437_v22 = vpop.f32.mrb[11].mxu1  ;;  %v691_v24 = vpop.f32.mrb[18].mxu0  ;;  %v2169_v31 = vld [vmem:[#allocation5 + $0x45] ss:$0 sm:$0xff] }
 0x55d   :  { %v2149_v27 = vmul.f32 -1.442695, %v689_v30  ;;  %v2457_v28 = vpop.f32.mrb[19].mxu0  ;;  %v2773_v20 = vld [vmem:[#allocation2 + $0x160] sm:$0xff]   ;;  %s2924_s0 = smov [#allocation8]  }
 0x55e   :  { %s2102_s15 = sshll.u32 %s2924_s0, 4  ;;  %s2103_s15 = int_to_ptr.vmem [resolvable:$true] %s2102_s15 }
 0x55f   :  { %2801 = vpow2.f32 %v2149_v27  ;;  %s2880_s17 = scalar_lea.vmem %s2103_s15, 64  ;;  %p2885_p11 = scmp.lt.s32.totalorder %s2103_s15, %s2103_s15 }
 0x560   :  { %p2881_p10 = scmp.ne.s32.totalorder %s2103_s15, %s2880_s17  ;;  %p2886_p12 = scmp.lt.s32.totalorder %s2880_s17, %s2880_s17 }
 0x562   :  { %p2887_p13 = por %p2886_p12, %p2885_p11 }
 0x564   :  { %p2888_p0 = pnand %p2887_p13, %p2881_p10 }
 0x569   :  { %v2802_v29 = vpop.eup %2801 }
 0x56a   :  { %v697_v32 = vadd.f32 1.0, %v2802_v29 }
 0x56c   :  { %2803 = vrcp.f32 %v697_v32 }
 0x576   :  { %v2804_v36 = vpop.eup %2803 }
 0x577   :  { %v700_v38 = vmul.f32 0.9, %v2804_v36 }
 0x579   :  { %v824_v41 = vpop.f32.mrb[12].mxu1  ;;  %v701_v42 = vadd.f32 0.1, %v700_v38 }
 0x57a   :  { %v825_v43 = vadd.f32 %v2151_v37, %v824_v41  ;;  %v2476_v44 = vpop.f32.mrb[13].mxu1 }
 0x57b   :  { %v827_v45 = vpop.f32.mrb[14].mxu1  ;;  %705 = vrot.lane.b32.xlu0 %v701_v42, %s2920_s3  ;;  %v1387_v46 = vmul.f32 %v1386_v40, %v701_v42 }
 0x57c   :  { %v828_v48 = vadd.f32 %v2151_v37, %v827_v45  ;;  %v2477_v49 = vpop.f32.mrb[15].mxu1  ;;  %v831_v52 = vmax.f32 %v825_v43, 0.0  ;;  %v2178_v37 = vld [vmem:[#allocation5 + $0x46] ss:$0 sm:$0xff] }
 0x57d   :  { %v3212_v50 = vadd.f32 %v1387_v46, %v620_v23  ;;  %v2766_v23 = vld [vmem:[#allocation7 + $0x30] ss:$8 sps:$4 sm:$0xff]   ;;  %v1302_v46 = vmul.u32 5, %v3110_v5 }
 0x57e   :  { %v832_v53 = vmax.f32 %v828_v48, 0.0  ;;  %1243 = vrot.lane.b32.xlu1 %v2766_v23, %s2921_s9  ;;  %v2187_v48 = vld [vmem:[#allocation5 + $0x4b] ss:$0 sm:$0xff] }
 0x57f   :  { %vm1303_vm14 = vcmp.ge.s32.totalorder %v3117_v9, %v1302_v46  ;;  %v2774_v23 = vld [vmem:[#allocation2 + $0x168] sm:$0xff]  }
 0x580   :  { %v833_v55 = vpack.c.bf16 %v832_v53, %v831_v52 }
 0x582   :  { %2495 = vmatmul.mubr.bf16.vlgmr.msra.gmra.mrb[20].mxu0 %v833_v55 }
 0x583   :  { %2534 = vmatprep.mubr.msk.bf16.mxu0 %vm2918_vm3, %v2916_v1  ;;  %2519 = vmatpush3.bf16.msra.mxu0 %v2757_v58  ;;  %v1394_v58 = vld [vmem:[#allocation5 + $0x28] sm:$0xff] }
 0x584   :  { %2520 = vmatprep.subr.bf16.mxu0 %v2916_v1 }
 0x587   :  { %2521 = vmatpush3.bf16.msra.mxu0 %v2758_v59 }
 0x588   :  { %2522 = vmatprep.subr.bf16.mxu0 %v2916_v1 }
 0x58b   :  { %2523 = vmatpush3.bf16.msra.mxu0 %v2759_v60 }
 0x58c   :  { %2524 = vmatprep.subr.bf16.mxu0 %v2916_v1 }
 0x58f   :  { %2525 = vmatpush3.bf16.msra.mxu0 %v2760_v61  ;;  %v2675_v61 = vpack.c.bf16 %v1394_v58, %v1393_v57  ;;  %v2789_v57 = vld [vmem:[#allocation2 + $0x1e0] sm:$0xff]   ;;  %v2790_v58 = vld [vmem:[#allocation2 + $0x1e8] sm:$0xff]  }
 0x590   :  { %2526 = vmatprep.subr.bf16.mxu0 %v2916_v1 }
 0x593   :  { %2527 = vmatpush3.bf16.msra.mxu0 %v2761_v63  ;;  %v1395_v63 = vld [vmem:[#allocation5 + $0x30] sm:$0xff] }
 0x594   :  { %2528 = vmatprep.subr.bf16.mxu0 %v2916_v1 }
 0x597   :  { %2529 = vmatpush3.bf16.msra.mxu0 %v2762_v3 }
 0x598   :  { %2530 = vmatprep.subr.bf16.mxu0 %v2916_v1 }
 0x59b   :  { %2531 = vmatpush3.bf16.msra.mxu0 %v2763_v14 }
 0x59c   :  { %2532 = vmatprep.subr.bf16.mxu0 %v2916_v1 }
 0x59f   :  { %2533 = vmatpush3.bf16.msra.mxu0 %v2764_v19  ;;  %v2772_v19 = vld [vmem:[#allocation2 + $0x158] sm:$0xff]  }
 0x5a0   :  { %2670 = vmatprep.subr.bf16.mxu0 %v2919_v62 }
 0x5cd   :  { %v1240_v30 = vpop.permute.xlu1 %1239 }
 0x5ed   :  { %v706_v2 = vpop.permute.xlu0 %705 }
 0x5ee   :  { %709 = vst.msk [vmem:[#allocation8] sm:$0xf] %vm708_vm13, %v706_v2  ;;  %v1396_v2 = vld [vmem:[#allocation5 + $0x38] sm:$0xff] }
 0x5ef   :  { %v2678_v3 = vpack.c.bf16 %v1396_v2, %v1395_v63 }
 0x5f0   :  { %v1244_v32 = vpop.permute.xlu1 %1243 }
 0x655   :  { %v938_v4 = vpop.f32.mrb[20].mxu0 }
 0x656   :  { %v939_v6 = vadd.f32 %v2160_v0, %v938_v4  ;;  %v2496_v7 = vpop.f32.mrb[21].mxu0  ;;  %v1390_v4 = vld [vmem:[#allocation5 + $0x8] sm:$0xff] }
 0x657   :  { %v941_v8 = vpop.f32.mrb[22].mxu0  ;;  %v1391_v7 = vld [vmem:[#allocation5 + $0x10] sm:$0xff] }
 0x658   :  { %v942_v10 = vadd.f32 %v2160_v0, %v941_v8  ;;  %v2497_v11 = vpop.f32.mrb[23].mxu0  ;;  %v945_v12 = vmax.f32 %v939_v6, 0.0  ;;  %v1389_v0 = vld [vmem:[#allocation5] sm:$0xff]  ;;  %v1392_v8 = vld [vmem:[#allocation5 + $0x18] sm:$0xff] }
 0x659   :  { %v2681_v6 = vpack.c.bf16 %v1390_v4, %v1389_v0  ;;  %v2769_v11 = vld [vmem:[#allocation2 + $0x140] sm:$0xff]  }
 0x65a   :  { %v946_v51 = vmax.f32 %v942_v10, 0.0  ;;  %v2684_v10 = vpack.c.bf16 %v1392_v8, %v1391_v7  ;;  %v2791_v8 = vld [vmem:[#allocation2 + $0x1f0] sm:$0xff]  }
 0x65c   :  { %v947_v13 = vpack.c.bf16 %v946_v51, %v945_v12 }
 0x65e   :  { %2515 = vmatmul.mubr.bf16.vlgmr.msra.gmra.mrb[16].mxu1 %v947_v13  ;;  %v2770_v13 = vld [vmem:[#allocation2 + $0x148] sm:$0xff]  }
 0x65f   :  { %2539 = vmatpush3.bf16.msra.mxu1 %v3195_v15  ;;  %2554 = vmatprep.mubr.msk.bf16.mxu1 %vm2918_vm3, %v2916_v1  ;;  %v2767_v15 = vld [vmem:[#allocation7 + $0x50] ss:$8 sps:$4 sm:$0xff]  }
 0x660   :  { %2540 = vmatprep.subr.bf16.mxu1 %v2916_v1  ;;  %1247 = vrot.lane.b32.xlu1 %v2767_v15, %s2921_s9  ;;  %v2775_v15 = vld [vmem:[#allocation2 + $0x170] sm:$0xff]  }
 0x663   :  { %2541 = vmatpush3.bf16.msra.mxu1 %v1240_v30  ;;  %v2778_v30 = vld [vmem:[#allocation2 + $0x188] sm:$0xff]  }
 0x664   :  { %1251 = vrot.lane.b32.xlu1 %v2768_v25, %s2921_s9  ;;  %2542 = vmatprep.subr.bf16.mxu1 %v2916_v1  ;;  %v2776_v25 = vld [vmem:[#allocation2 + $0x178] sm:$0xff]  }
 0x667   :  { %2543 = vmatpush3.bf16.msra.mxu1 %v3197_v16 }
 0x668   :  { %1552 = vperm.xlu1 %2703, %v2813_v26   ;;  %2544 = vmatprep.subr.bf16.mxu1 %v2916_v1  ;;  %v2777_v26 = vld [vmem:[#allocation2 + $0x180] sm:$0xff]  }
 0x66b   :  { %2545 = vmatpush3.bf16.msra.mxu1 %v1244_v32 }
 0x66c   :  { %2546 = vmatprep.subr.bf16.mxu1 %v2916_v1 }
 0x66f   :  { %2547 = vmatpush3.bf16.msra.mxu1 %v3199_v17 }
 0x670   :  { %2548 = vmatprep.subr.bf16.mxu1 %v2916_v1 }
 0x6d2   :  { %v1248_v36 = vpop.permute.xlu1 %1247 }
 0x6d3   :  { %2549 = vmatpush3.bf16.msra.mxu1 %v1248_v36 }
 0x6d4   :  { %2550 = vmatprep.subr.bf16.mxu1 %v2916_v1 }
 0x6d6   :  { %v1252_v16 = vpop.permute.xlu1 %1251 }
 0x6d7   :  { %2551 = vmatpush3.bf16.msra.mxu1 %v3201_v18  ;;  %v1304_v18 = vadd.s32 1, %v3110_v5 }
 0x6d8   :  { %2552 = vmatprep.subr.bf16.mxu1 %v2916_v1 }
 0x6d9   :  { %v1305_v47 = vmul.u32 5, %v1304_v18 }
 0x6db   :  { %2553 = vmatpush3.bf16.msra.mxu1 %v1252_v16  ;;  %vm1306_vm15 = vcmp.lt.s32.totalorder %v3117_v9, %v1305_v47 }
 0x6dc   :  { %2607 = vmatprep.subr.bf16.mxu1 %v2916_v1  ;;  %vm1307_vm4 = vmand %vm1303_vm14, %vm1306_vm15 }
 0x6dd   :  { %v1308_v60 = vsel %vm1307_vm4, 0.2, %v2916_v1 }
 0x731   :  { %v1052_v21 = vpop.f32.mrb[16].mxu1 }
 0x732   :  { %v1053_v22 = vadd.f32 %v2169_v31, %v1052_v21  ;;  %v2516_v24 = vpop.f32.mrb[17].mxu1  ;;  %v2780_v21 = vld [vmem:[#allocation2 + $0x198] sm:$0xff]  }
 0x733   :  { %v1055_v27 = vpop.f32.mrb[18].mxu1  ;;  %v2782_v24 = vld [vmem:[#allocation2 + $0x1a8] sm:$0xff]  }
 0x734   :  { %v1056_v28 = vadd.f32 %v2169_v31, %v1055_v27  ;;  %v2517_v29 = vpop.f32.mrb[19].mxu1  ;;  %v1059_v33 = vmax.f32 %v1053_v22, 0.0  ;;  %v2779_v31 = vld [vmem:[#allocation2 + $0x190] sm:$0xff]   ;;  %v2781_v22 = vld [vmem:[#allocation2 + $0x1a0] sm:$0xff]   ;;  %v2923_v27 = vmov 1966171168  }
 0x736   :  { %v1060_v34 = vmax.f32 %v1056_v28, 0.0  ;;  %v1562_v28 = vunpack.c.l.s4 %v2923_v27  ;;  %v2220_v27 = vld [vmem:[#allocation5 + $0x49] ss:$0 sm:$0xff] }
 0x738   :  { %v1061_v35 = vpack.c.bf16 %v1060_v34, %v1059_v33  ;;  %v1563_v29 = vunpack.c.0.s8 %v1562_v28  ;;  %v2200_v33 = vld [vmem:[#allocation5 + $0x41] ss:$0 sm:$0xff] }
 0x73a   :  { %2535 = vmatmul.mubr.bf16.vlgmr.msra.gmra.mrb[24].mxu0 %v1061_v35  ;;  %v1566_v35 = vsub.s32 %v1563_v29, %v3110_v5 }
 0x73b   :  { %2562 = vmatprep.mubr.msk.f32.mxu0 %vm2918_vm3, %v2916_v1 }
 0x80d   :  { %v1166_v38 = vpop.f32.mrb[24].mxu0 }
 0x80e   :  { %v1167_v17 = vadd.f32 %v2178_v37, %v1166_v38  ;;  %v2536_v39 = vpop.f32.mrb[25].mxu0  ;;  %v1553_v38 = vpop.permute.xlu1 %1552 }
 0x80f   :  { %v1169_v40 = vpop.f32.mrb[26].mxu0  ;;  %v1585_v39 = vsub.s32 0, %v3110_v5  ;;  %v2784_v5 = vld [vmem:[#allocation2 + $0x1b8] sm:$0xff]  }
 0x810   :  { %v1170_v41 = vadd.f32 %v2178_v37, %v1169_v40  ;;  %v2537_v42 = vpop.f32.mrb[27].mxu0  ;;  %v1173_v43 = vmax.f32 %v1167_v17, 0.0  ;;  %v2201_v37 = vld [vmem:[#allocation5 + $0x40] ss:$0 sm:$0xff] }
 0x812   :  { %v1174_v44 = vmax.f32 %v1170_v41, 0.0  ;;  %v1559_v41 = vmul.f32 %v2201_v37, %v1553_v38 }
 0x814   :  { %v1175_v45 = vpack.c.bf16 %v1174_v44, %v1173_v43 }
 0x816   :  { %2555 = vmatmul.mubr.bf16.vlgmr.msra.gmra.mrb[20].mxu1 %v1175_v45 }
 0x817   :  { %2623 = vmatprep.mubr.msk.bf16.mxu1 %vm2918_vm3, %v2916_v1  ;;  %2608 = vmatpush3.bf16.msra.mxu1 %v2777_v26 }
 0x818   :  { %2609 = vmatprep.subr.bf16.mxu1 %v2916_v1 }
 0x81b   :  { %2610 = vmatpush3.bf16.msra.mxu1 %v2778_v30 }
 0x81c   :  { %2611 = vmatprep.subr.bf16.mxu1 %v2916_v1 }
 0x81f   :  { %2612 = vmatpush3.bf16.msra.mxu1 %v2779_v31 }
 0x820   :  { %2613 = vmatprep.subr.bf16.mxu1 %v2916_v1 }
 0x823   :  { %2614 = vmatpush3.bf16.msra.mxu1 %v2780_v21 }
 0x824   :  { %2615 = vmatprep.subr.bf16.mxu1 %v2916_v1 }
 0x827   :  { %2616 = vmatpush3.bf16.msra.mxu1 %v2781_v22  ;;  %v2799_v22 = vld [vmem:[#allocation7 + $0x64] ss:$8 sps:$4 sm:$0xff]  }
 0x828   :  { %2617 = vmatprep.subr.bf16.mxu1 %v2916_v1 }
 0x82b   :  { %2618 = vmatpush3.bf16.msra.mxu1 %v2782_v24  ;;  %v2800_v24 = vld [vmem:[#allocation7 + $0x74] ss:$8 sps:$4 sm:$0xff]  }
 0x82c   :  { %2619 = vmatprep.subr.bf16.mxu1 %v2916_v1 }
 0x8e9   :  { %v1295_v49 = vpop.f32.mrb[20].mxu1 }
 0x8ea   :  { %v2556_v52 = vpop.f32.mrb[21].mxu1  ;;  %v1296_v54 = vadd.f32 %v2187_v48, %v1295_v49 }
 0x8eb   :  { %v1298_v53 = vpop.f32.mrb[22].mxu1  ;;  %v2783_v52 = vld [vmem:[#allocation2 + $0x1b0] sm:$0xff]  }
 0x8ec   :  { %v1299_v55 = vadd.f32 %v2187_v48, %v1298_v53  ;;  %v2557_v56 = vpop.f32.mrb[23].mxu1  ;;  %2620 = vmatpush3.bf16.msra.mxu1 %v2783_v52  ;;  %v2785_v53 = vld [vmem:[#allocation2 + $0x1c0] sm:$0xff]  }
 0x8ed   :  { %2621 = vmatprep.subr.bf16.mxu1 %v2916_v1  ;;  %v2788_v56 = vld [vmem:[#allocation2 + $0x1d8] sm:$0xff]  }
 0x8ee   :  { %v2671_v59 = vpack.c.bf16 %v1299_v55, %v1296_v54  ;;  %v2786_v54 = vld [vmem:[#allocation2 + $0x1c8] sm:$0xff]   ;;  %v2787_v55 = vld [vmem:[#allocation2 + $0x1d0] sm:$0xff]  }
 0x8f0   :  { %2673 = vmatpush3.bf16.msk.msra.mxu0 %vm2672_vm2, %v2671_v59  ;;  %2622 = vmatpush3.bf16.msra.mxu1 %v2784_v5  ;;  %v2202_v59 = vld [vmem:[#allocation5 + $0x47] ss:$0 sm:$0xff] }
 0x8f1   :  { %2674 = vmatprep.subr.bf16.mxu0 %v2919_v62  ;;  %2647 = vmatprep.subr.bf16.mxu1 %v2916_v1 }
 0x8f3   :  { %2563 = vmatmul.mubr.msk.f32.vlgmr.msra.gmra.mrb[28].mxu0 %vm1309_vm5, %v1308_v60 }
 0x8f4   :  { %2676 = vmatpush3.bf16.msra.mxu0 %v2675_v61  ;;  %2573 = vmatprep.mubr.msk.f32.mxu0 %vm2918_vm3, %v2916_v1 }
 0x8f5   :  { %2677 = vmatprep.subr.bf16.mxu0 %v2919_v62 }
 0x8f8   :  { %2679 = vmatpush3.bf16.msra.mxu0 %v2678_v3 }
 0x8f9   :  { %2680 = vmatprep.subr.bf16.mxu0 %v2919_v62 }
 0x8fb   :  { %2574 = vmatmul.mubr.msk.f32.vlgmr.msra.gmra.mrb[30].mxu0 %vm496_vm11, %v3212_v50  ;;  %v2771_v50 = vld [vmem:[#allocation2 + $0x150] sm:$0xff]  }
 0x8fc   :  { %2682 = vmatpush3.bf16.msra.mxu0 %v2681_v6  ;;  %2584 = vmatprep.mubr.msk.f32.mxu0 %vm2918_vm3, %v2916_v1 }
 0x8fd   :  { %2683 = vmatprep.subr.bf16.mxu0 %v2919_v62 }
 0x900   :  { %2685 = vmatpush3.bf16.msra.mxu0 %v2684_v10  ;;  %v2792_v10 = vld [vmem:[#allocation2 + $0x1f8] sm:$0xff]  }
 0x901   :  { %2587 = vmatprep.subr.bf16.mxu0 %v2916_v1 }
 0x9c6   :  { %v1382_v12 = vpop.f32.mrb[28].mxu0 }
 0x9c7   :  { %2585 = vmatmul.mubr.msk.f32.vlgmr.msra.gmra.mrb[32].mxu0 %vm496_vm11, %v1382_v12  ;;  %v2564_v51 = vpop.f32.mrb[29].mxu0  ;;  %v2794_v12 = vld [vmem:[#allocation7 + $0x14] ss:$8 sps:$4 sm:$0xff]  }
 0x9c8   :  { %2588 = vmatpush3.bf16.msra.mxu0 %v2769_v11  ;;  %2603 = vmatprep.mubr.msk.bf16.mxu0 %vm2918_vm3, %v2916_v1  ;;  %v2793_v11 = vld [vmem:[#allocation7 + $0x4] ss:$8 sps:$4 sm:$0xff]  }
 0x9c9   :  { %2589 = vmatprep.subr.bf16.mxu0 %v2916_v1  ;;  %v2795_v51 = vld [vmem:[#allocation7 + $0x24] ss:$8 sps:$4 sm:$0xff]  }
 0x9cc   :  { %2590 = vmatpush3.bf16.msra.mxu0 %v2770_v13  ;;  %v2796_v13 = vld [vmem:[#allocation7 + $0x34] ss:$8 sps:$4 sm:$0xff]  }
 0x9cd   :  { %2591 = vmatprep.subr.bf16.mxu0 %v2916_v1 }
 0x9ce   :  { %v1466_v62 = vpop.f32.mrb[30].mxu0 }
 0x9cf   :  { %v2575_v14 = vpop.f32.mrb[31].mxu0 }
 0x9d0   :  { %2592 = vmatpush3.bf16.msra.mxu0 %v2771_v50  ;;  %v2797_v50 = vld [vmem:[#allocation7 + $0x44] ss:$8 sps:$4 sm:$0xff]   ;;  %v2211_v14 = vld [vmem:[#allocation5 + $0x48] ss:$0 sm:$0xff] }
 0x9d1   :  { %2593 = vmatprep.subr.bf16.mxu0 %v2916_v1 }
 0x9d4   :  { %2594 = vmatpush3.bf16.msra.mxu0 %v2772_v19 }
 0x9d5   :  { %2595 = vmatprep.subr.bf16.mxu0 %v2916_v1 }
 0x9d8   :  { %2596 = vmatpush3.bf16.msra.mxu0 %v2773_v20 }
 0x9d9   :  { %2597 = vmatprep.subr.bf16.mxu0 %v2916_v1 }
 0x9dc   :  { %2598 = vmatpush3.bf16.msra.mxu0 %v2774_v23 }
 0x9dd   :  { %2599 = vmatprep.subr.bf16.mxu0 %v2916_v1 }
 0x9e0   :  { %2600 = vmatpush3.bf16.msra.mxu0 %v2775_v15 }
 0x9e1   :  { %2601 = vmatprep.subr.bf16.mxu0 %v2916_v1 }
 0x9e4   :  { %2602 = vmatpush3.bf16.msra.mxu0 %v2776_v25 }
 0x9e5   :  { %2627 = vmatprep.subr.bf16.mxu0 %v2916_v1 }
 0xa9a   :  { %v1539_v32 = vpop.f32.mrb[32].mxu0 }
 0xa9b   :  { %v1540_v34 = vadd.f32 %v1539_v32, %v1466_v62  ;;  %v2586_v36 = vpop.f32.mrb[33].mxu0  ;;  %v2798_v62 = vld [vmem:[#allocation7 + $0x54] ss:$8 sps:$4 sm:$0xff]  }
 0xa9d   :  { %v1548_v16 = vadd.f32 %v2200_v33, %v1540_v34 }
 0xa9f   :  { %v1567_v17 = vrot.slane %v1548_v16, %v1566_v35 }
 0xaa1   :  { %v1568_v40 = vcombine.high %v1567_v17, %v1567_v17  ;;  %v1575_v42 = vrot.slane %v1567_v17, %v1566_v35 }
 0xaa3   :  { %v1582_v43 = vrot.slane %v1568_v40, %v1566_v35  ;;  %v1586_v44 = vrot.slane %v1575_v42, %v1585_v39 }
 0xaa5   :  { %v1590_v45 = vrot.slane %v1582_v43, %v1585_v39  ;;  %v1593_v18 = vadd.f32 %v1586_v44, %v1559_v41 }
 0xaa7   :  { %v1594_v46 = vadd.f32 %v1590_v45, %v1559_v41  ;;  %v1595_v47 = vmax.f32 %v1593_v18, 0.0 }
 0xaa9   :  { %v1596_v48 = vmax.f32 %v1594_v46, 0.0 }
 0xaab   :  { %v1597_v49 = vpack.c.bf16 %v1596_v48, %v1595_v47 }
 0xaad   :  { %2604 = vmatmul.mubr.bf16.vlgmr.msra.gmra.mrb[36].mxu0 %v1597_v49 }
 0xaae   :  { %2643 = vmatprep.mubr.msk.bf16.mxu0 %vm2918_vm3, %v2916_v1  ;;  %2628 = vmatpush3.bf16.msra.mxu0 %v2785_v53 }
 0xaaf   :  { %2629 = vmatprep.subr.bf16.mxu0 %v2916_v1 }
 0xab2   :  { %2630 = vmatpush3.bf16.msra.mxu0 %v2786_v54 }
 0xab3   :  { %2631 = vmatprep.subr.bf16.mxu0 %v2916_v1 }
 0xab6   :  { %2632 = vmatpush3.bf16.msra.mxu0 %v2787_v55 }
 0xab7   :  { %2633 = vmatprep.subr.bf16.mxu0 %v2916_v1 }
 0xaba   :  { %2634 = vmatpush3.bf16.msra.mxu0 %v2788_v56 }
 0xabb   :  { %2635 = vmatprep.subr.bf16.mxu0 %v2916_v1 }
 0xabe   :  { %2636 = vmatpush3.bf16.msra.mxu0 %v2789_v57 }
 0xabf   :  { %2637 = vmatprep.subr.bf16.mxu0 %v2916_v1 }
 0xac2   :  { %2638 = vmatpush3.bf16.msra.mxu0 %v2790_v58 }
 0xac3   :  { %2639 = vmatprep.subr.bf16.mxu0 %v2916_v1 }
 0xac6   :  { %2640 = vmatpush3.bf16.msra.mxu0 %v2791_v8 }
 0xac7   :  { %2641 = vmatprep.subr.bf16.mxu0 %v2916_v1 }
 0xaca   :  { %2642 = vmatpush3.bf16.msra.mxu0 %v2792_v10 }
 0xb80   :  { %v1702_v60 = vpop.f32.mrb[36].mxu0 }
 0xb81   :  { %v1703_v61 = vadd.f32 %v2202_v59, %v1702_v60  ;;  %v2605_v63 = vpop.f32.mrb[37].mxu0 }
 0xb82   :  { %v1705_v2 = vpop.f32.mrb[38].mxu0 }
 0xb83   :  { %v1706_v3 = vadd.f32 %v2202_v59, %v1705_v2  ;;  %v2606_v0 = vpop.f32.mrb[39].mxu0  ;;  %v1709_v4 = vmax.f32 %v1703_v61, 0.0 }
 0xb85   :  { %v1710_v6 = vmax.f32 %v1706_v3, 0.0 }
 0xb87   :  { %v1711_v7 = vpack.c.bf16 %v1710_v6, %v1709_v4 }
 0xb89   :  { %2624 = vmatmul.mubr.bf16.vlgmr.msra.gmra.mrb[24].mxu1 %v1711_v7 }
 0xb8a   :  { %2663 = vmatprep.mubr.msk.bf16.mxu1 %vm2918_vm3, %v2916_v1  ;;  %2648 = vmatpush3.bf16.msra.mxu1 %v2793_v11 }
 0xb8b   :  { %2649 = vmatprep.subr.bf16.mxu1 %v2916_v1 }
 0xb8e   :  { %2650 = vmatpush3.bf16.msra.mxu1 %v2794_v12 }
 0xb8f   :  { %2651 = vmatprep.subr.bf16.mxu1 %v2916_v1 }
 0xb92   :  { %2652 = vmatpush3.bf16.msra.mxu1 %v2795_v51 }
 0xb93   :  { %2653 = vmatprep.subr.bf16.mxu1 %v2916_v1 }
 0xb96   :  { %2654 = vmatpush3.bf16.msra.mxu1 %v2796_v13 }
 0xb97   :  { %2655 = vmatprep.subr.bf16.mxu1 %v2916_v1 }
 0xb9a   :  { %2656 = vmatpush3.bf16.msra.mxu1 %v2797_v50 }
 0xb9b   :  { %2657 = vmatprep.subr.bf16.mxu1 %v2916_v1 }
 0xb9e   :  { %2658 = vmatpush3.bf16.msra.mxu1 %v2798_v62 }
 0xb9f   :  { %2659 = vmatprep.subr.bf16.mxu1 %v2916_v1 }
 0xba2   :  { %2660 = vmatpush3.bf16.msra.mxu1 %v2799_v22 }
 0xba3   :  { %2661 = vmatprep.subr.bf16.mxu1 %v2916_v1 }
 0xba6   :  { %2662 = vmatpush3.bf16.msra.mxu1 %v2800_v24 }
 0xc5c   :  { %v1816_v19 = vpop.f32.mrb[24].mxu1 }
 0xc5d   :  { %v1817_v20 = vadd.f32 %v2211_v14, %v1816_v19  ;;  %v2625_v23 = vpop.f32.mrb[25].mxu1 }
 0xc5e   :  { %v1819_v15 = vpop.f32.mrb[26].mxu1 }
 0xc5f   :  { %v1820_v25 = vadd.f32 %v2211_v14, %v1819_v15  ;;  %v2626_v26 = vpop.f32.mrb[27].mxu1  ;;  %v1823_v30 = vmax.f32 %v1817_v20, 0.0 }
 0xc61   :  { %v1824_v31 = vmax.f32 %v1820_v25, 0.0 }
 0xc63   :  { %v1825_v21 = vpack.c.bf16 %v1824_v31, %v1823_v30 }
 0xc65   :  { %2644 = vmatmul.mubr.bf16.vlgmr.msra.gmra.mrb[40].mxu0 %v1825_v21 }
 0xd38   :  { %v1930_v28 = vpop.f32.mrb[40].mxu0 }
 0xd39   :  { %v1931_v29 = vadd.f32 %v2220_v27, %v1930_v28  ;;  %v2645_v32 = vpop.f32.mrb[41].mxu0 }
 0xd3a   :  { %v1933_v33 = vpop.f32.mrb[42].mxu0 }
 0xd3b   :  { %v1934_v34 = vadd.f32 %v2220_v27, %v1933_v33  ;;  %v2646_v35 = vpop.f32.mrb[43].mxu0  ;;  %v1937_v36 = vmax.f32 %v1931_v29, 0.0 }
 0xd3d   :  { %v1938_v16 = vmax.f32 %v1934_v34, 0.0 }
 0xd3f   :  { %v1939_v37 = vpack.c.bf16 %v1938_v16, %v1937_v36 }
 0xd41   :  { %2664 = vmatmul.mubr.bf16.vlgmr.msra.gmra.mrb[28].mxu1 %v1939_v37 }
 0xd42   :  { %2891 = shalt.err (!%p2888_p0)
}
 0xd43   :  { %s2892_s5 = scalar_lea.hbm %s3334_s6, 64 }
 0xd44   :  { %p2893_p1 = scmp.ne.s32.totalorder %s3334_s6, %s2892_s5  ;;  %p2896_p2 = scmp.lt.u32.totalorder %s2892_s5, %s3334_s6 }
 0xd46   :  { %p2898_p3 = pnand %p2896_p2, %p2893_p1 }
 0xd48   :  { %2901 = shalt.err (!%p2898_p3)
}
 0xd49   :  { %2105 = dma.vmem_to_hbm [thread:$0]  %s2103_s15, 64, %s3334_s6, [#allocation4]   ;;  %v2229_v1 = vld [vmem:[#allocation5 + $0x4d] ss:$0 sm:$0xff]  ;;  %vm2050_vm8 = vcmp.lt.s32.totalorder %v3117_v9, 4  ;;  %vm2093_vm9 = vcmask 64512  }
 0xe14   :  { %v2043_v38 = vpop.f32.mrb[28].mxu1 }
 0xe15   :  { %v2044_v17 = vadd.f32 %v2229_v1, %v2043_v38  ;;  %v2665_v39 = vpop.f32.mrb[29].mxu1 }
 0xe16   :  { %v2046_v40 = vpop.f32.mrb[30].mxu1 }
 0xe17   :  { %v2057_v41 = vand.u32 2147483647, %v2044_v17  ;;  %v2047_v42 = vadd.f32 %v2229_v1, %v2046_v40  ;;  %v2666_v43 = vpop.f32.mrb[31].mxu1  ;;  %v2051_v2 = vmax.f32 %v2044_v17, 0.0  ;;  %vm2053_vm6 = vcmp.ne.f32.partialorder %v2044_v17, %v2044_v17 }
 0xe19   :  { %v2059_v44 = vsub.f32 0.0, %v2057_v41  ;;  %v2058_v45 = vand.u32 2147483647, %v2047_v42  ;;  %v2052_v7 = vmax.f32 %v2047_v42, 0.0  ;;  %vm2054_vm7 = vcmp.ne.f32.partialorder %v2047_v42, %v2047_v42 }
 0xe1b   :  { %v2061_v18 = vmul.f32 1.442695, %v2059_v44  ;;  %v2060_v46 = vsub.f32 0.0, %v2058_v45 }
 0xe1d   :  { %2805 = vpow2.f32 %v2061_v18  ;;  %v2063_v47 = vmul.f32 1.442695, %v2060_v46 }
 0xe1f   :  { %2807 = vpow2.f32 %v2063_v47 }
 0xe27   :  { %v2806_v48 = vpop.eup %2805 }
 0xe28   :  { %v2065_v49 = vadd.f32 1.0, %v2806_v48  ;;  %v2068_v53 = vmul.f32 -0.5, %v2806_v48  ;;  %v2071_v56 = vand.u32 2147483647, %v2806_v48 }
 0xe29   :  { %v2808_v52 = vpop.eup %2807 }
 0xe2a   :  { %2809 = vlog2.f32 %v2065_v49  ;;  %v2074_v5 = vadd.f32 1.0, %v2808_v52  ;;  %v2077_v54 = vmul.f32 -0.5, %v2808_v52  ;;  %v2069_v55 = vadd.f32 1.0, %v2068_v53 }
 0xe2b   :  { %v2080_v59 = vand.u32 2147483647, %v2808_v52  ;;  %vm2072_vm0 = vcmp.lt.f32.partialorder %v2071_v56, 0.0004427343 }
 0xe2c   :  { %2811 = vlog2.f32 %v2074_v5  ;;  %v2078_v57 = vadd.f32 1.0, %v2077_v54  ;;  %v2070_v61 = vmul.f32 %v2806_v48, %v2069_v55 }
 0xe2d   :  { %vm2081_vm3 = vcmp.lt.f32.partialorder %v2080_v59, 0.0004427343 }
 0xe2e   :  { %v2079_v4 = vmul.f32 %v2808_v52, %v2078_v57 }
 0xe34   :  { %v2810_v58 = vpop.eup %2809 }
 0xe35   :  { %v2067_v60 = vmul.f32 0.6931472, %v2810_v58 }
 0xe36   :  { %v2812_v63 = vpop.eup %2811 }
 0xe37   :  { %v2073_v3 = vsel %vm2072_vm0, %v2070_v61, %v2067_v60  ;;  %v2076_v0 = vmul.f32 0.6931472, %v2812_v63 }
 0xe38   :  { %v2083_v6 = vadd.f32 %v2073_v3, %v2051_v2 }
 0xe39   :  { %v2082_v8 = vsel %vm2081_vm3, %v2079_v4, %v2076_v0 }
 0xe3a   :  { %v2085_v10 = vsel %vm2053_vm6, %v2044_v17, %v2083_v6  ;;  %v2084_v11 = vadd.f32 %v2082_v8, %v2052_v7 }
 0xe3b   :  { %v2087_v12 = vmul.f32 0.9, %v2085_v10 }
 0xe3c   :  { %v2086_v51 = vsel %vm2054_vm7, %v2047_v42, %v2084_v11 }
 0xe3d   :  { %v2089_v13 = vadd.f32 0.1, %v2087_v12  ;;  %v2088_v50 = vmul.f32 0.9, %v2086_v51 }
 0xe3f   :  { %v2091_v62 = vsel %vm2050_vm8, %v2044_v17, %v2089_v13  ;;  %v2090_v14 = vadd.f32 0.1, %v2088_v50 }
 0xe40   :  { %2094 = vst.msk [vmem:[%s3335_s7] sm:$0xff] %vm2093_vm9, %v2091_v62 }
 0xe41   :  { %v2092_v19 = vsel %vm2050_vm8, %v2047_v42, %v2090_v14 }
 0xe42   :  { %2095 = vst.msk [vmem:[%s3335_s7 + $0x8] sm:$0xff] %vm2093_vm9, %v2092_v19 }
 0xe43   :  { %2906 = dma.done.wait [#allocation4], 64  }
 0xe44   :  { %2907 = vsyncadd [#allocation4], 4294967232 }
 0xe45   :  { %2113 = vsyncpa [#allocation3], 1 }
 0xe46   :  { %2114 = vsyncpa [#allocation6], 1 }
 0xe47   :  { %2115 = vsyncpa [#allocation4], 1 }

</bundles_post_ra>
